<compile_context>
chip_gen: v6e
topology: v6e:2x2x1
jax: 0.10.0
libtpu: 0.0.40
codegen_flags: <defaults>
</compile_context>

<pallas_src>
import functools

import jax
import jax.numpy as jnp
from jax.experimental import pallas as pl
from jax.experimental.pallas import tpu as pltpu


def _round_up(x, m):
    return ((x + m - 1) // m) * m


# ----------------------------------------------------------------------------
# Fused TCNN forward kernel: one grid step == one block of B samples.
# ----------------------------------------------------------------------------
def _tcnn_fused_kernel(x_ref, w1_ref, b1_ref, w2_ref, b2_ref, wc_ref, bc_ref,
                       emb_ref, pred_ref, *, fs, H, wout1, wout2, conv1_on_vpu):
    B, F2, R2 = emb_ref.shape          # (batch block, out filters, Wout2*H)
    R1 = wout1 * H

    # Hoist the tiny VMEM-resident weights/biases out of the per-sample loop.
    w1 = [w1_ref[k] for k in range(fs)]        # each (F1, C)
    w2 = [w2_ref[k] for k in range(fs)]        # each (F2, F1)
    b1 = b1_ref[...]                           # (F1, 1)
    b2 = b2_ref[...]                           # (F2, 1)

    # Per-filter rows of the conv2 activation, gathered across the B samples so
    # the classification head can run with M = B (one matmul per filter per
    # grid step instead of per sample).
    rows_by_f = [[] for _ in range(F2)]

    for b in range(B):                         # static unroll over the block
        xb = x_ref[b]                          # (C, W*H)

        # ---- conv1: valid (fs, 1) conv == fs shifted-slice contractions ----
        if conv1_on_vpu:
            # C == 1: the contraction is a per-filter scalar -> broadcast FMA
            # on the VPU; skips the MXU and any channel zero-padding.
            acc1 = w1[0][:, 0:1] * xb[0:1, 0:R1]
            for k in range(1, fs):
                acc1 = acc1 + w1[k][:, 0:1] * xb[0:1, k * H:k * H + R1]
        else:
            acc1 = jnp.dot(w1[0], xb[:, 0:R1],
                           preferred_element_type=jnp.float32)
            for k in range(1, fs):
                acc1 = acc1 + jnp.dot(w1[k], xb[:, k * H:k * H + R1],
                                      preferred_element_type=jnp.float32)
        a1 = jnp.maximum(acc1 + b1, 0.0)       # (F1, wout1*H)

        # ---- conv2 (contraction over the F1 feature channels) --------------
        acc2 = jnp.dot(w2[0], a1[:, 0:R2], preferred_element_type=jnp.float32)
        for k in range(1, fs):
            acc2 = acc2 + jnp.dot(w2[k], a1[:, k * H:k * H + R2],
                                  preferred_element_type=jnp.float32)
        a2 = jnp.maximum(acc2 + b2, 0.0)       # (F2, wout2*H)

        # Embedding is already NCHW-flattened per sample: (F2, Wout2*H).
        emb_ref[b] = a2.astype(emb_ref.dtype)

        for f in range(F2):
            rows_by_f[f].append(a2[f:f + 1, :])        # (1, R2)

    # ---- classification head, batched over the whole block -----------------
    #   pred[b, nc] = bc[nc] + sum_f a2[b, f, :] @ wc[f, :, nc]
    acc = None
    for f in range(F2):
        a_f = jnp.concatenate(rows_by_f[f], axis=0)    # (B, R2)
        d = jnp.dot(a_f, wc_ref[f], preferred_element_type=jnp.float32)
        acc = d if acc is None else acc + d
    pred_ref[...] = (acc + bc_ref[...]).astype(pred_ref.dtype)


# ----------------------------------------------------------------------------
# Wrapper: layout prep (reshape / pad / weight permute — pure-JAX glue, no
# data-path transposes) + single pallas_call over batch blocks.
# ----------------------------------------------------------------------------
def tcnn_forward(x_nchw, params, *, block_b=8):
    N, C, W, H = x_nchw.shape
    w1 = params["w1"]                         # (F1, C, fs, 1)
    F1, _, fs, _ = w1.shape
    w2 = params["w2"]                         # (F2, F1, fs, 1)
    F2 = w2.shape[0]
    wc = params["wc"]                         # (NC, F2*Wout2*H)
    bc = params["bc"]                         # (NC,)
    NC = wc.shape[0]

    wout1 = W - fs + 1
    wout2 = wout1 - fs + 1
    R = wout2 * H
    assert wc.shape[1] == F2 * R

    # Batch block: multiple of 8 so the (B, NC_pad) prediction block is
    # sublane-aligned.  Keep >= 2 grid steps when possible so v7x's two
    # TensorCores both get work ("parallel" grid axis); for large batches raise
    # block_b (each step needs ~2*(B*C*W*H + B*F2*R + B*NC_pad)*4 bytes of
    # VMEM, which fits the 16 MiB v5e scoped default up to B of several
    # thousand at these shapes).
    B = max(8, _round_up(min(block_b, N), 8))
    n_steps = pl.cdiv(N, B)
    N_pad = n_steps * B

    NC_pad = _round_up(NC, 128)               # lane-dense head output
    conv1_on_vpu = (C == 1)

    # Input: NCHW -> (N, C, W*H) is a pure reshape (no transpose); pad batch.
    x2 = x_nchw.reshape(N, C, W * H)
    if N_pad != N:
        x2 = jnp.pad(x2, ((0, N_pad - N), (0, 0), (0, 0)))

    # Conv weights as (fs, out, in) so w*_ref[k] is the per-tap (out, in) matrix.
    w1t = jnp.transpose(w1[..., 0], (2, 0, 1))                  # (fs, F1, C)
    b1c = params["b1"].reshape(F1, 1)
    w2t = jnp.transpose(w2[..., 0], (2, 0, 1))                  # (fs, F2, F1)
    b2c = params["b2"].reshape(F2, 1)

    # Head weights permuted to (F2, R, NC) to match the kernel's (f, r)
    # embedding layout (same contraction order as PyTorch's flatten); pad NC.
    wct = wc.reshape(NC, F2, R).transpose(1, 2, 0)              # (F2, R, NC)
    wct = jnp.pad(wct, ((0, 0), (0, 0), (0, NC_pad - NC)))
    bcr = jnp.pad(bc, (0, NC_pad - NC)).reshape(1, NC_pad)

    kernel = functools.partial(_tcnn_fused_kernel, fs=fs, H=H, wout1=wout1,
                               wout2=wout2, conv1_on_vpu=conv1_on_vpu)

    # Advisory cost estimate using the TRUE (unpadded) contraction sizes.
    flops = N * (2 * F1 * C * fs * wout1 * H
                 + 2 * F2 * F1 * fs * wout2 * H
                 + 2 * F2 * R * NC)
    bytes_accessed = 4 * (x2.size + w1t.size + b1c.size + w2t.size + b2c.size
                          + wct.size + bcr.size + N_pad * F2 * R + N_pad * NC_pad)

    emb_flat, pred_pad = pl.pallas_call(
        kernel,
        out_shape=(
            jax.ShapeDtypeStruct((N_pad, F2, R), jnp.float32),
            jax.ShapeDtypeStruct((N_pad, NC_pad), jnp.float32),
        ),
        grid=(n_steps,),
        in_specs=[
            pl.BlockSpec((B, C, W * H), lambda g: (g, 0, 0)),   # per-step batch block
            pl.BlockSpec((fs, F1, C), lambda g: (0, 0, 0)),     # VMEM-resident weights
            pl.BlockSpec((F1, 1), lambda g: (0, 0)),
            pl.BlockSpec((fs, F2, F1), lambda g: (0, 0, 0)),
            pl.BlockSpec((F2, 1), lambda g: (0, 0)),
            pl.BlockSpec((F2, R, NC_pad), lambda g: (0, 0, 0)),
            pl.BlockSpec((1, NC_pad), lambda g: (0, 0)),
        ],
        out_specs=(
            pl.BlockSpec((B, F2, R), lambda g: (g, 0, 0)),
            pl.BlockSpec((B, NC_pad), lambda g: (g, 0)),
        ),
        compiler_params=pltpu.CompilerParams(
            dimension_semantics=("parallel",)),
        cost_estimate=pl.CostEstimate(
            flops=flops, transcendentals=0, bytes_accessed=bytes_accessed),
    )(x2, w1t, b1c, w2t, b2c, wct, bcr)

    embedding = emb_flat[:N].reshape(N, F2, wout2, H)   # NCHW, pure reshape
    pred = pred_pad[:N, :NC]
    reconst = 0
    return embedding, pred, reconst


# ----------------------------------------------------------------------------
# Pure-JAX reference (no Pallas) for correctness verification.
# ----------------------------------------------------------------------------
def _ref_conv_kx1(x, w, b, relu):
    N, C, W, H = x.shape
    O, _, fs, _ = w.shape
    Wout = W - fs + 1
    patches = jnp.stack([x[:, :, k:k + Wout, :] for k in range(fs)], axis=-1)
    y = jnp.einsum("ncwhk,ock->nowh", patches, w[..., 0]) + b[None, :, None, None]
    return jnp.maximum(y, 0.0) if relu else y


def _ref_forward(x, params):
    x = _ref_conv_kx1(x, params["w1"], params["b1"], True)
    x = _ref_conv_kx1(x, params["w2"], params["b2"], True)
    emb = x
    flat = x.reshape(x.shape[0], -1)
    pred = flat @ params["wc"].T + params["bc"]
    return emb, pred


# ----------------------------------------------------------------------------
# Deterministic parameter init (shapes implied by the module's __init__).
# ----------------------------------------------------------------------------
def init_params(key, in_channels, filter_size, num_filters, latent_size, num_classes):
    ks = jax.random.split(key, 6)
    scale = 0.1
    return {
        "w1": scale * jax.random.normal(ks[0], (num_filters, in_channels, filter_size, 1), jnp.float32),
        "b1": scale * jax.random.normal(ks[1], (num_filters,), jnp.float32),
        "w2": scale * jax.random.normal(ks[2], (num_filters, num_filters, filter_size, 1), jnp.float32),
        "b2": scale * jax.random.normal(ks[3], (num_filters,), jnp.float32),
        "wc": scale * jax.random.normal(ks[4], (num_classes, latent_size), jnp.float32),
        "bc": scale * jax.random.normal(ks[5], (num_classes,), jnp.float32),
    }


if __name__ == "__main__":
    # Small shapes consistent with the module's forward.
    batch = 16                 # 2 grid steps of 8 samples each
    in_channels = 1
    window_length = 16
    sensor_channels = 4
    filter_size = 3
    num_filters = 8
    num_classes = 5

    # compute_feature_map_size_tcnn (reconstructed): two valid (fs,1) convs.
    W_feat = window_length - 2 * (filter_size - 1)   # 12
    H_feat = sensor_channels                          # 4
    latent_size = W_feat * H_feat * num_filters       # 384

    key = jax.random.PRNGKey(0)
    k_x, k_p = jax.random.split(key)
    x = jax.random.normal(k_x, (batch, in_channels, window_length, sensor_channels), jnp.float32)
    params = init_params(k_p, in_channels, filter_size, num_filters, latent_size, num_classes)

    fwd = jax.jit(tcnn_forward)
    embedding, pred, reconst = fwd(x, params)
    jax.block_until_ready(embedding)
    jax.block_until_ready(pred)

    # Sanity: shapes + numerics vs pure-JAX reference.
    assert embedding.shape == (batch, num_filters, W_feat, H_feat)
    assert pred.shape == (batch, num_classes)
    assert reconst == 0
    ref_emb, ref_pred = _ref_forward(x, params)
    assert jnp.allclose(embedding, ref_emb, atol=1e-4, rtol=1e-4)
    assert jnp.allclose(pred, ref_pred, atol=1e-4, rtol=1e-4)

    print("KERNEL_OK")
</pallas_src>

<mosaic_0001>
module attributes {stable_mosaic.version = 11 : i64} {
  func.func @_tcnn_fused_kernel(%arg0: i32, %arg1: memref<8x1x64xf32, #tpu.memory_space<vmem>>, %arg2: memref<3x8x1xf32, #tpu.memory_space<vmem>>, %arg3: memref<8x1xf32, #tpu.memory_space<vmem>>, %arg4: memref<3x8x8xf32, #tpu.memory_space<vmem>>, %arg5: memref<8x1xf32, #tpu.memory_space<vmem>>, %arg6: memref<8x48x128xf32, #tpu.memory_space<vmem>>, %arg7: memref<1x128xf32, #tpu.memory_space<vmem>>, %arg8: memref<8x8x48xf32, #tpu.memory_space<vmem>>, %arg9: memref<8x128xf32, #tpu.memory_space<vmem>>) attributes {dimension_semantics = [#tpu.dimension_semantics<parallel>], iteration_bounds = array<i64: 2>, scalar_prefetch = 0 : i64, scratch_operands = 0 : i64, tpu.core_type = #tpu.core_type<tc>, window_params = [{transform_indices = @transform_0, window_bounds = array<i64: 8, 1, 64>}, {pipeline_mode = #tpu.pipeline_mode<synchronous>, transform_indices = @transform_1, window_bounds = array<i64: 3, 8, 1>}, {pipeline_mode = #tpu.pipeline_mode<synchronous>, transform_indices = @transform_2, window_bounds = array<i64: 8, 1>}, {pipeline_mode = #tpu.pipeline_mode<synchronous>, transform_indices = @transform_3, window_bounds = array<i64: 3, 8, 8>}, {pipeline_mode = #tpu.pipeline_mode<synchronous>, transform_indices = @transform_4, window_bounds = array<i64: 8, 1>}, {pipeline_mode = #tpu.pipeline_mode<synchronous>, transform_indices = @transform_5, window_bounds = array<i64: 8, 48, 128>}, {pipeline_mode = #tpu.pipeline_mode<synchronous>, transform_indices = @transform_6, window_bounds = array<i64: 1, 128>}, {transform_indices = @transform_7, window_bounds = array<i64: 8, 8, 48>}, {transform_indices = @transform_8, window_bounds = array<i64: 8, 128>}]} {
    %c0 = arith.constant 0 : index
    %c0_0 = arith.constant 0 : index
    %c0_1 = arith.constant 0 : index
    %0 = vector.load %arg2[%c0, %c0_0, %c0_1] : memref<3x8x1xf32, #tpu.memory_space<vmem>>, vector<1x8x1xf32>
    %1 = vector.shape_cast %0 : vector<1x8x1xf32> to vector<8x1xf32>
    %c1 = arith.constant 1 : index
    %c0_2 = arith.constant 0 : index
    %c0_3 = arith.constant 0 : index
    %2 = vector.load %arg2[%c1, %c0_2, %c0_3] : memref<3x8x1xf32, #tpu.memory_space<vmem>>, vector<1x8x1xf32>
    %3 = vector.shape_cast %2 : vector<1x8x1xf32> to vector<8x1xf32>
    %c2 = arith.constant 2 : index
    %c0_4 = arith.constant 0 : index
    %c0_5 = arith.constant 0 : index
    %4 = vector.load %arg2[%c2, %c0_4, %c0_5] : memref<3x8x1xf32, #tpu.memory_space<vmem>>, vector<1x8x1xf32>
    %5 = vector.shape_cast %4 : vector<1x8x1xf32> to vector<8x1xf32>
    %c0_6 = arith.constant 0 : index
    %c0_7 = arith.constant 0 : index
    %c0_8 = arith.constant 0 : index
    %6 = vector.load %arg4[%c0_6, %c0_7, %c0_8] : memref<3x8x8xf32, #tpu.memory_space<vmem>>, vector<1x8x8xf32>
    %7 = vector.shape_cast %6 : vector<1x8x8xf32> to vector<8x8xf32>
    %c1_9 = arith.constant 1 : index
    %c0_10 = arith.constant 0 : index
    %c0_11 = arith.constant 0 : index
    %8 = vector.load %arg4[%c1_9, %c0_10, %c0_11] : memref<3x8x8xf32, #tpu.memory_space<vmem>>, vector<1x8x8xf32>
    %9 = vector.shape_cast %8 : vector<1x8x8xf32> to vector<8x8xf32>
    %c2_12 = arith.constant 2 : index
    %c0_13 = arith.constant 0 : index
    %c0_14 = arith.constant 0 : index
    %10 = vector.load %arg4[%c2_12, %c0_13, %c0_14] : memref<3x8x8xf32, #tpu.memory_space<vmem>>, vector<1x8x8xf32>
    %11 = vector.shape_cast %10 : vector<1x8x8xf32> to vector<8x8xf32>
    %c0_15 = arith.constant 0 : index
    %c0_16 = arith.constant 0 : index
    %12 = vector.load %arg3[%c0_15, %c0_16] : memref<8x1xf32, #tpu.memory_space<vmem>>, vector<8x1xf32>
    %c0_17 = arith.constant 0 : index
    %c0_18 = arith.constant 0 : index
    %13 = vector.load %arg5[%c0_17, %c0_18] : memref<8x1xf32, #tpu.memory_space<vmem>>, vector<8x1xf32>
    %c0_19 = arith.constant 0 : index
    %c0_20 = arith.constant 0 : index
    %c0_21 = arith.constant 0 : index
    %14 = vector.load %arg1[%c0_19, %c0_20, %c0_21] : memref<8x1x64xf32, #tpu.memory_space<vmem>>, vector<1x1x64xf32>
    %15 = vector.shape_cast %14 : vector<1x1x64xf32> to vector<1x64xf32>
    %16 = vector.extract_strided_slice %15 {offsets = [0, 0], sizes = [1, 56], strides = [1, 1]} : vector<1x64xf32> to vector<1x56xf32>
    %17 = vector.broadcast %1 : vector<8x1xf32> to vector<8x56xf32>
    %18 = vector.broadcast %16 : vector<1x56xf32> to vector<8x56xf32>
    %19 = arith.mulf %17, %18 : vector<8x56xf32>
    %20 = vector.extract_strided_slice %15 {offsets = [0, 4], sizes = [1, 56], strides = [1, 1]} : vector<1x64xf32> to vector<1x56xf32>
    %21 = vector.broadcast %3 : vector<8x1xf32> to vector<8x56xf32>
    %22 = vector.broadcast %20 : vector<1x56xf32> to vector<8x56xf32>
    %23 = arith.mulf %21, %22 : vector<8x56xf32>
    %24 = arith.addf %19, %23 : vector<8x56xf32>
    %25 = vector.extract_strided_slice %15 {offsets = [0, 8], sizes = [1, 56], strides = [1, 1]} : vector<1x64xf32> to vector<1x56xf32>
    %26 = vector.broadcast %5 : vector<8x1xf32> to vector<8x56xf32>
    %27 = vector.broadcast %25 : vector<1x56xf32> to vector<8x56xf32>
    %28 = arith.mulf %26, %27 : vector<8x56xf32>
    %29 = arith.addf %24, %28 : vector<8x56xf32>
    %30 = vector.broadcast %12 : vector<8x1xf32> to vector<8x56xf32>
    %31 = arith.addf %29, %30 : vector<8x56xf32>
    %cst = arith.constant 0.000000e+00 : f32
    %32 = vector.broadcast %cst : f32 to vector<8x56xf32>
    %33 = arith.maximumf %31, %32 : vector<8x56xf32>
    %34 = vector.extract_strided_slice %33 {offsets = [0, 0], sizes = [8, 48], strides = [1, 1]} : vector<8x56xf32> to vector<8x48xf32>
    %cst_22 = arith.constant dense<0.000000e+00> : vector<8x48xf32>
    %35 = tpu.matmul %7, %34, %cst_22 {dimension_numbers = #tpu.dot_dimension_numbers<[1], [0], [0], [1], [0, 0, 1, 1], [], []>} : vector<8x8xf32>, vector<8x48xf32>, vector<8x48xf32> -> vector<8x48xf32>
    %36 = vector.extract_strided_slice %33 {offsets = [0, 4], sizes = [8, 48], strides = [1, 1]} : vector<8x56xf32> to vector<8x48xf32>
    %cst_23 = arith.constant dense<0.000000e+00> : vector<8x48xf32>
    %37 = tpu.matmul %9, %36, %cst_23 {dimension_numbers = #tpu.dot_dimension_numbers<[1], [0], [0], [1], [0, 0, 1, 1], [], []>} : vector<8x8xf32>, vector<8x48xf32>, vector<8x48xf32> -> vector<8x48xf32>
    %38 = arith.addf %35, %37 : vector<8x48xf32>
    %39 = vector.extract_strided_slice %33 {offsets = [0, 8], sizes = [8, 48], strides = [1, 1]} : vector<8x56xf32> to vector<8x48xf32>
    %cst_24 = arith.constant dense<0.000000e+00> : vector<8x48xf32>
    %40 = tpu.matmul %11, %39, %cst_24 {dimension_numbers = #tpu.dot_dimension_numbers<[1], [0], [0], [1], [0, 0, 1, 1], [], []>} : vector<8x8xf32>, vector<8x48xf32>, vector<8x48xf32> -> vector<8x48xf32>
    %41 = arith.addf %38, %40 : vector<8x48xf32>
    %42 = vector.broadcast %13 : vector<8x1xf32> to vector<8x48xf32>
    %43 = arith.addf %41, %42 : vector<8x48xf32>
    %cst_25 = arith.constant 0.000000e+00 : f32
    %44 = vector.broadcast %cst_25 : f32 to vector<8x48xf32>
    %45 = arith.maximumf %43, %44 : vector<8x48xf32>
    %c0_26 = arith.constant 0 : index
    %c0_27 = arith.constant 0 : index
    %c0_28 = arith.constant 0 : index
    %46 = vector.load %arg8[%c0_26, %c0_27, %c0_28] : memref<8x8x48xf32, #tpu.memory_space<vmem>>, vector<1x8x48xf32>
    %47 = vector.shape_cast %46 : vector<1x8x48xf32> to vector<8x48xf32>
    %48 = vector.shape_cast %45 : vector<8x48xf32> to vector<1x8x48xf32>
    tpu.vector_store %arg8[%c0_26, %c0_27, %c0_28], %48 {strides = array<i32>} : memref<8x8x48xf32, #tpu.memory_space<vmem>>, vector<1x8x48xf32>,
    %49 = vector.extract_strided_slice %45 {offsets = [0, 0], sizes = [1, 48], strides = [1, 1]} : vector<8x48xf32> to vector<1x48xf32>
    %50 = vector.extract_strided_slice %45 {offsets = [1, 0], sizes = [1, 48], strides = [1, 1]} : vector<8x48xf32> to vector<1x48xf32>
    %51 = vector.extract_strided_slice %45 {offsets = [2, 0], sizes = [1, 48], strides = [1, 1]} : vector<8x48xf32> to vector<1x48xf32>
    %52 = vector.extract_strided_slice %45 {offsets = [3, 0], sizes = [1, 48], strides = [1, 1]} : vector<8x48xf32> to vector<1x48xf32>
    %53 = vector.extract_strided_slice %45 {offsets = [4, 0], sizes = [1, 48], strides = [1, 1]} : vector<8x48xf32> to vector<1x48xf32>
    %54 = vector.extract_strided_slice %45 {offsets = [5, 0], sizes = [1, 48], strides = [1, 1]} : vector<8x48xf32> to vector<1x48xf32>
    %55 = vector.extract_strided_slice %45 {offsets = [6, 0], sizes = [1, 48], strides = [1, 1]} : vector<8x48xf32> to vector<1x48xf32>
    %56 = vector.extract_strided_slice %45 {offsets = [7, 0], sizes = [1, 48], strides = [1, 1]} : vector<8x48xf32> to vector<1x48xf32>
    %c1_29 = arith.constant 1 : index
    %c0_30 = arith.constant 0 : index
    %c0_31 = arith.constant 0 : index
    %57 = vector.load %arg1[%c1_29, %c0_30, %c0_31] : memref<8x1x64xf32, #tpu.memory_space<vmem>>, vector<1x1x64xf32>
    %58 = vector.shape_cast %57 : vector<1x1x64xf32> to vector<1x64xf32>
    %59 = vector.extract_strided_slice %58 {offsets = [0, 0], sizes = [1, 56], strides = [1, 1]} : vector<1x64xf32> to vector<1x56xf32>
    %60 = vector.broadcast %1 : vector<8x1xf32> to vector<8x56xf32>
    %61 = vector.broadcast %59 : vector<1x56xf32> to vector<8x56xf32>
    %62 = arith.mulf %60, %61 : vector<8x56xf32>
    %63 = vector.extract_strided_slice %58 {offsets = [0, 4], sizes = [1, 56], strides = [1, 1]} : vector<1x64xf32> to vector<1x56xf32>
    %64 = vector.broadcast %3 : vector<8x1xf32> to vector<8x56xf32>
    %65 = vector.broadcast %63 : vector<1x56xf32> to vector<8x56xf32>
    %66 = arith.mulf %64, %65 : vector<8x56xf32>
    %67 = arith.addf %62, %66 : vector<8x56xf32>
    %68 = vector.extract_strided_slice %58 {offsets = [0, 8], sizes = [1, 56], strides = [1, 1]} : vector<1x64xf32> to vector<1x56xf32>
    %69 = vector.broadcast %5 : vector<8x1xf32> to vector<8x56xf32>
    %70 = vector.broadcast %68 : vector<1x56xf32> to vector<8x56xf32>
    %71 = arith.mulf %69, %70 : vector<8x56xf32>
    %72 = arith.addf %67, %71 : vector<8x56xf32>
    %73 = vector.broadcast %12 : vector<8x1xf32> to vector<8x56xf32>
    %74 = arith.addf %72, %73 : vector<8x56xf32>
    %cst_32 = arith.constant 0.000000e+00 : f32
    %75 = vector.broadcast %cst_32 : f32 to vector<8x56xf32>
    %76 = arith.maximumf %74, %75 : vector<8x56xf32>
    %77 = vector.extract_strided_slice %76 {offsets = [0, 0], sizes = [8, 48], strides = [1, 1]} : vector<8x56xf32> to vector<8x48xf32>
    %cst_33 = arith.constant dense<0.000000e+00> : vector<8x48xf32>
    %78 = tpu.matmul %7, %77, %cst_33 {dimension_numbers = #tpu.dot_dimension_numbers<[1], [0], [0], [1], [0, 0, 1, 1], [], []>} : vector<8x8xf32>, vector<8x48xf32>, vector<8x48xf32> -> vector<8x48xf32>
    %79 = vector.extract_strided_slice %76 {offsets = [0, 4], sizes = [8, 48], strides = [1, 1]} : vector<8x56xf32> to vector<8x48xf32>
    %cst_34 = arith.constant dense<0.000000e+00> : vector<8x48xf32>
    %80 = tpu.matmul %9, %79, %cst_34 {dimension_numbers = #tpu.dot_dimension_numbers<[1], [0], [0], [1], [0, 0, 1, 1], [], []>} : vector<8x8xf32>, vector<8x48xf32>, vector<8x48xf32> -> vector<8x48xf32>
    %81 = arith.addf %78, %80 : vector<8x48xf32>
    %82 = vector.extract_strided_slice %76 {offsets = [0, 8], sizes = [8, 48], strides = [1, 1]} : vector<8x56xf32> to vector<8x48xf32>
    %cst_35 = arith.constant dense<0.000000e+00> : vector<8x48xf32>
    %83 = tpu.matmul %11, %82, %cst_35 {dimension_numbers = #tpu.dot_dimension_numbers<[1], [0], [0], [1], [0, 0, 1, 1], [], []>} : vector<8x8xf32>, vector<8x48xf32>, vector<8x48xf32> -> vector<8x48xf32>
    %84 = arith.addf %81, %83 : vector<8x48xf32>
    %85 = vector.broadcast %13 : vector<8x1xf32> to vector<8x48xf32>
    %86 = arith.addf %84, %85 : vector<8x48xf32>
    %cst_36 = arith.constant 0.000000e+00 : f32
    %87 = vector.broadcast %cst_36 : f32 to vector<8x48xf32>
    %88 = arith.maximumf %86, %87 : vector<8x48xf32>
    %c1_37 = arith.constant 1 : index
    %c0_38 = arith.constant 0 : index
    %c0_39 = arith.constant 0 : index
    %89 = vector.load %arg8[%c1_37, %c0_38, %c0_39] : memref<8x8x48xf32, #tpu.memory_space<vmem>>, vector<1x8x48xf32>
    %90 = vector.shape_cast %89 : vector<1x8x48xf32> to vector<8x48xf32>
    %91 = vector.shape_cast %88 : vector<8x48xf32> to vector<1x8x48xf32>
    tpu.vector_store %arg8[%c1_37, %c0_38, %c0_39], %91 {strides = array<i32>} : memref<8x8x48xf32, #tpu.memory_space<vmem>>, vector<1x8x48xf32>,
    %92 = vector.extract_strided_slice %88 {offsets = [0, 0], sizes = [1, 48], strides = [1, 1]} : vector<8x48xf32> to vector<1x48xf32>
    %93 = vector.extract_strided_slice %88 {offsets = [1, 0], sizes = [1, 48], strides = [1, 1]} : vector<8x48xf32> to vector<1x48xf32>
    %94 = vector.extract_strided_slice %88 {offsets = [2, 0], sizes = [1, 48], strides = [1, 1]} : vector<8x48xf32> to vector<1x48xf32>
    %95 = vector.extract_strided_slice %88 {offsets = [3, 0], sizes = [1, 48], strides = [1, 1]} : vector<8x48xf32> to vector<1x48xf32>
    %96 = vector.extract_strided_slice %88 {offsets = [4, 0], sizes = [1, 48], strides = [1, 1]} : vector<8x48xf32> to vector<1x48xf32>
    %97 = vector.extract_strided_slice %88 {offsets = [5, 0], sizes = [1, 48], strides = [1, 1]} : vector<8x48xf32> to vector<1x48xf32>
    %98 = vector.extract_strided_slice %88 {offsets = [6, 0], sizes = [1, 48], strides = [1, 1]} : vector<8x48xf32> to vector<1x48xf32>
    %99 = vector.extract_strided_slice %88 {offsets = [7, 0], sizes = [1, 48], strides = [1, 1]} : vector<8x48xf32> to vector<1x48xf32>
    %c2_40 = arith.constant 2 : index
    %c0_41 = arith.constant 0 : index
    %c0_42 = arith.constant 0 : index
    %100 = vector.load %arg1[%c2_40, %c0_41, %c0_42] : memref<8x1x64xf32, #tpu.memory_space<vmem>>, vector<1x1x64xf32>
    %101 = vector.shape_cast %100 : vector<1x1x64xf32> to vector<1x64xf32>
    %102 = vector.extract_strided_slice %101 {offsets = [0, 0], sizes = [1, 56], strides = [1, 1]} : vector<1x64xf32> to vector<1x56xf32>
    %103 = vector.broadcast %1 : vector<8x1xf32> to vector<8x56xf32>
    %104 = vector.broadcast %102 : vector<1x56xf32> to vector<8x56xf32>
    %105 = arith.mulf %103, %104 : vector<8x56xf32>
    %106 = vector.extract_strided_slice %101 {offsets = [0, 4], sizes = [1, 56], strides = [1, 1]} : vector<1x64xf32> to vector<1x56xf32>
    %107 = vector.broadcast %3 : vector<8x1xf32> to vector<8x56xf32>
    %108 = vector.broadcast %106 : vector<1x56xf32> to vector<8x56xf32>
    %109 = arith.mulf %107, %108 : vector<8x56xf32>
    %110 = arith.addf %105, %109 : vector<8x56xf32>
    %111 = vector.extract_strided_slice %101 {offsets = [0, 8], sizes = [1, 56], strides = [1, 1]} : vector<1x64xf32> to vector<1x56xf32>
    %112 = vector.broadcast %5 : vector<8x1xf32> to vector<8x56xf32>
    %113 = vector.broadcast %111 : vector<1x56xf32> to vector<8x56xf32>
    %114 = arith.mulf %112, %113 : vector<8x56xf32>
    %115 = arith.addf %110, %114 : vector<8x56xf32>
    %116 = vector.broadcast %12 : vector<8x1xf32> to vector<8x56xf32>
    %117 = arith.addf %115, %116 : vector<8x56xf32>
    %cst_43 = arith.constant 0.000000e+00 : f32
    %118 = vector.broadcast %cst_43 : f32 to vector<8x56xf32>
    %119 = arith.maximumf %117, %118 : vector<8x56xf32>
    %120 = vector.extract_strided_slice %119 {offsets = [0, 0], sizes = [8, 48], strides = [1, 1]} : vector<8x56xf32> to vector<8x48xf32>
    %cst_44 = arith.constant dense<0.000000e+00> : vector<8x48xf32>
    %121 = tpu.matmul %7, %120, %cst_44 {dimension_numbers = #tpu.dot_dimension_numbers<[1], [0], [0], [1], [0, 0, 1, 1], [], []>} : vector<8x8xf32>, vector<8x48xf32>, vector<8x48xf32> -> vector<8x48xf32>
    %122 = vector.extract_strided_slice %119 {offsets = [0, 4], sizes = [8, 48], strides = [1, 1]} : vector<8x56xf32> to vector<8x48xf32>
    %cst_45 = arith.constant dense<0.000000e+00> : vector<8x48xf32>
    %123 = tpu.matmul %9, %122, %cst_45 {dimension_numbers = #tpu.dot_dimension_numbers<[1], [0], [0], [1], [0, 0, 1, 1], [], []>} : vector<8x8xf32>, vector<8x48xf32>, vector<8x48xf32> -> vector<8x48xf32>
    %124 = arith.addf %121, %123 : vector<8x48xf32>
    %125 = vector.extract_strided_slice %119 {offsets = [0, 8], sizes = [8, 48], strides = [1, 1]} : vector<8x56xf32> to vector<8x48xf32>
    %cst_46 = arith.constant dense<0.000000e+00> : vector<8x48xf32>
    %126 = tpu.matmul %11, %125, %cst_46 {dimension_numbers = #tpu.dot_dimension_numbers<[1], [0], [0], [1], [0, 0, 1, 1], [], []>} : vector<8x8xf32>, vector<8x48xf32>, vector<8x48xf32> -> vector<8x48xf32>
    %127 = arith.addf %124, %126 : vector<8x48xf32>
    %128 = vector.broadcast %13 : vector<8x1xf32> to vector<8x48xf32>
    %129 = arith.addf %127, %128 : vector<8x48xf32>
    %cst_47 = arith.constant 0.000000e+00 : f32
    %130 = vector.broadcast %cst_47 : f32 to vector<8x48xf32>
    %131 = arith.maximumf %129, %130 : vector<8x48xf32>
    %c2_48 = arith.constant 2 : index
    %c0_49 = arith.constant 0 : index
    %c0_50 = arith.constant 0 : index
    %132 = vector.load %arg8[%c2_48, %c0_49, %c0_50] : memref<8x8x48xf32, #tpu.memory_space<vmem>>, vector<1x8x48xf32>
    %133 = vector.shape_cast %132 : vector<1x8x48xf32> to vector<8x48xf32>
    %134 = vector.shape_cast %131 : vector<8x48xf32> to vector<1x8x48xf32>
    tpu.vector_store %arg8[%c2_48, %c0_49, %c0_50], %134 {strides = array<i32>} : memref<8x8x48xf32, #tpu.memory_space<vmem>>, vector<1x8x48xf32>,
    %135 = vector.extract_strided_slice %131 {offsets = [0, 0], sizes = [1, 48], strides = [1, 1]} : vector<8x48xf32> to vector<1x48xf32>
    %136 = vector.extract_strided_slice %131 {offsets = [1, 0], sizes = [1, 48], strides = [1, 1]} : vector<8x48xf32> to vector<1x48xf32>
    %137 = vector.extract_strided_slice %131 {offsets = [2, 0], sizes = [1, 48], strides = [1, 1]} : vector<8x48xf32> to vector<1x48xf32>
    %138 = vector.extract_strided_slice %131 {offsets = [3, 0], sizes = [1, 48], strides = [1, 1]} : vector<8x48xf32> to vector<1x48xf32>
    %139 = vector.extract_strided_slice %131 {offsets = [4, 0], sizes = [1, 48], strides = [1, 1]} : vector<8x48xf32> to vector<1x48xf32>
    %140 = vector.extract_strided_slice %131 {offsets = [5, 0], sizes = [1, 48], strides = [1, 1]} : vector<8x48xf32> to vector<1x48xf32>
    %141 = vector.extract_strided_slice %131 {offsets = [6, 0], sizes = [1, 48], strides = [1, 1]} : vector<8x48xf32> to vector<1x48xf32>
    %142 = vector.extract_strided_slice %131 {offsets = [7, 0], sizes = [1, 48], strides = [1, 1]} : vector<8x48xf32> to vector<1x48xf32>
    %c3 = arith.constant 3 : index
    %c0_51 = arith.constant 0 : index
    %c0_52 = arith.constant 0 : index
    %143 = vector.load %arg1[%c3, %c0_51, %c0_52] : memref<8x1x64xf32, #tpu.memory_space<vmem>>, vector<1x1x64xf32>
    %144 = vector.shape_cast %143 : vector<1x1x64xf32> to vector<1x64xf32>
    %145 = vector.extract_strided_slice %144 {offsets = [0, 0], sizes = [1, 56], strides = [1, 1]} : vector<1x64xf32> to vector<1x56xf32>
    %146 = vector.broadcast %1 : vector<8x1xf32> to vector<8x56xf32>
    %147 = vector.broadcast %145 : vector<1x56xf32> to vector<8x56xf32>
    %148 = arith.mulf %146, %147 : vector<8x56xf32>
    %149 = vector.extract_strided_slice %144 {offsets = [0, 4], sizes = [1, 56], strides = [1, 1]} : vector<1x64xf32> to vector<1x56xf32>
    %150 = vector.broadcast %3 : vector<8x1xf32> to vector<8x56xf32>
    %151 = vector.broadcast %149 : vector<1x56xf32> to vector<8x56xf32>
    %152 = arith.mulf %150, %151 : vector<8x56xf32>
    %153 = arith.addf %148, %152 : vector<8x56xf32>
    %154 = vector.extract_strided_slice %144 {offsets = [0, 8], sizes = [1, 56], strides = [1, 1]} : vector<1x64xf32> to vector<1x56xf32>
    %155 = vector.broadcast %5 : vector<8x1xf32> to vector<8x56xf32>
    %156 = vector.broadcast %154 : vector<1x56xf32> to vector<8x56xf32>
    %157 = arith.mulf %155, %156 : vector<8x56xf32>
    %158 = arith.addf %153, %157 : vector<8x56xf32>
    %159 = vector.broadcast %12 : vector<8x1xf32> to vector<8x56xf32>
    %160 = arith.addf %158, %159 : vector<8x56xf32>
    %cst_53 = arith.constant 0.000000e+00 : f32
    %161 = vector.broadcast %cst_53 : f32 to vector<8x56xf32>
    %162 = arith.maximumf %160, %161 : vector<8x56xf32>
    %163 = vector.extract_strided_slice %162 {offsets = [0, 0], sizes = [8, 48], strides = [1, 1]} : vector<8x56xf32> to vector<8x48xf32>
    %cst_54 = arith.constant dense<0.000000e+00> : vector<8x48xf32>
    %164 = tpu.matmul %7, %163, %cst_54 {dimension_numbers = #tpu.dot_dimension_numbers<[1], [0], [0], [1], [0, 0, 1, 1], [], []>} : vector<8x8xf32>, vector<8x48xf32>, vector<8x48xf32> -> vector<8x48xf32>
    %165 = vector.extract_strided_slice %162 {offsets = [0, 4], sizes = [8, 48], strides = [1, 1]} : vector<8x56xf32> to vector<8x48xf32>
    %cst_55 = arith.constant dense<0.000000e+00> : vector<8x48xf32>
    %166 = tpu.matmul %9, %165, %cst_55 {dimension_numbers = #tpu.dot_dimension_numbers<[1], [0], [0], [1], [0, 0, 1, 1], [], []>} : vector<8x8xf32>, vector<8x48xf32>, vector<8x48xf32> -> vector<8x48xf32>
    %167 = arith.addf %164, %166 : vector<8x48xf32>
    %168 = vector.extract_strided_slice %162 {offsets = [0, 8], sizes = [8, 48], strides = [1, 1]} : vector<8x56xf32> to vector<8x48xf32>
    %cst_56 = arith.constant dense<0.000000e+00> : vector<8x48xf32>
    %169 = tpu.matmul %11, %168, %cst_56 {dimension_numbers = #tpu.dot_dimension_numbers<[1], [0], [0], [1], [0, 0, 1, 1], [], []>} : vector<8x8xf32>, vector<8x48xf32>, vector<8x48xf32> -> vector<8x48xf32>
    %170 = arith.addf %167, %169 : vector<8x48xf32>
    %171 = vector.broadcast %13 : vector<8x1xf32> to vector<8x48xf32>
    %172 = arith.addf %170, %171 : vector<8x48xf32>
    %cst_57 = arith.constant 0.000000e+00 : f32
    %173 = vector.broadcast %cst_57 : f32 to vector<8x48xf32>
    %174 = arith.maximumf %172, %173 : vector<8x48xf32>
    %c3_58 = arith.constant 3 : index
    %c0_59 = arith.constant 0 : index
    %c0_60 = arith.constant 0 : index
    %175 = vector.load %arg8[%c3_58, %c0_59, %c0_60] : memref<8x8x48xf32, #tpu.memory_space<vmem>>, vector<1x8x48xf32>
    %176 = vector.shape_cast %175 : vector<1x8x48xf32> to vector<8x48xf32>
    %177 = vector.shape_cast %174 : vector<8x48xf32> to vector<1x8x48xf32>
    tpu.vector_store %arg8[%c3_58, %c0_59, %c0_60], %177 {strides = array<i32>} : memref<8x8x48xf32, #tpu.memory_space<vmem>>, vector<1x8x48xf32>,
    %178 = vector.extract_strided_slice %174 {offsets = [0, 0], sizes = [1, 48], strides = [1, 1]} : vector<8x48xf32> to vector<1x48xf32>
    %179 = vector.extract_strided_slice %174 {offsets = [1, 0], sizes = [1, 48], strides = [1, 1]} : vector<8x48xf32> to vector<1x48xf32>
    %180 = vector.extract_strided_slice %174 {offsets = [2, 0], sizes = [1, 48], strides = [1, 1]} : vector<8x48xf32> to vector<1x48xf32>
    %181 = vector.extract_strided_slice %174 {offsets = [3, 0], sizes = [1, 48], strides = [1, 1]} : vector<8x48xf32> to vector<1x48xf32>
    %182 = vector.extract_strided_slice %174 {offsets = [4, 0], sizes = [1, 48], strides = [1, 1]} : vector<8x48xf32> to vector<1x48xf32>
    %183 = vector.extract_strided_slice %174 {offsets = [5, 0], sizes = [1, 48], strides = [1, 1]} : vector<8x48xf32> to vector<1x48xf32>
    %184 = vector.extract_strided_slice %174 {offsets = [6, 0], sizes = [1, 48], strides = [1, 1]} : vector<8x48xf32> to vector<1x48xf32>
    %185 = vector.extract_strided_slice %174 {offsets = [7, 0], sizes = [1, 48], strides = [1, 1]} : vector<8x48xf32> to vector<1x48xf32>
    %c4 = arith.constant 4 : index
    %c0_61 = arith.constant 0 : index
    %c0_62 = arith.constant 0 : index
    %186 = vector.load %arg1[%c4, %c0_61, %c0_62] : memref<8x1x64xf32, #tpu.memory_space<vmem>>, vector<1x1x64xf32>
    %187 = vector.shape_cast %186 : vector<1x1x64xf32> to vector<1x64xf32>
    %188 = vector.extract_strided_slice %187 {offsets = [0, 0], sizes = [1, 56], strides = [1, 1]} : vector<1x64xf32> to vector<1x56xf32>
    %189 = vector.broadcast %1 : vector<8x1xf32> to vector<8x56xf32>
    %190 = vector.broadcast %188 : vector<1x56xf32> to vector<8x56xf32>
    %191 = arith.mulf %189, %190 : vector<8x56xf32>
    %192 = vector.extract_strided_slice %187 {offsets = [0, 4], sizes = [1, 56], strides = [1, 1]} : vector<1x64xf32> to vector<1x56xf32>
    %193 = vector.broadcast %3 : vector<8x1xf32> to vector<8x56xf32>
    %194 = vector.broadcast %192 : vector<1x56xf32> to vector<8x56xf32>
    %195 = arith.mulf %193, %194 : vector<8x56xf32>
    %196 = arith.addf %191, %195 : vector<8x56xf32>
    %197 = vector.extract_strided_slice %187 {offsets = [0, 8], sizes = [1, 56], strides = [1, 1]} : vector<1x64xf32> to vector<1x56xf32>
    %198 = vector.broadcast %5 : vector<8x1xf32> to vector<8x56xf32>
    %199 = vector.broadcast %197 : vector<1x56xf32> to vector<8x56xf32>
    %200 = arith.mulf %198, %199 : vector<8x56xf32>
    %201 = arith.addf %196, %200 : vector<8x56xf32>
    %202 = vector.broadcast %12 : vector<8x1xf32> to vector<8x56xf32>
    %203 = arith.addf %201, %202 : vector<8x56xf32>
    %cst_63 = arith.constant 0.000000e+00 : f32
    %204 = vector.broadcast %cst_63 : f32 to vector<8x56xf32>
    %205 = arith.maximumf %203, %204 : vector<8x56xf32>
    %206 = vector.extract_strided_slice %205 {offsets = [0, 0], sizes = [8, 48], strides = [1, 1]} : vector<8x56xf32> to vector<8x48xf32>
    %cst_64 = arith.constant dense<0.000000e+00> : vector<8x48xf32>
    %207 = tpu.matmul %7, %206, %cst_64 {dimension_numbers = #tpu.dot_dimension_numbers<[1], [0], [0], [1], [0, 0, 1, 1], [], []>} : vector<8x8xf32>, vector<8x48xf32>, vector<8x48xf32> -> vector<8x48xf32>
    %208 = vector.extract_strided_slice %205 {offsets = [0, 4], sizes = [8, 48], strides = [1, 1]} : vector<8x56xf32> to vector<8x48xf32>
    %cst_65 = arith.constant dense<0.000000e+00> : vector<8x48xf32>
    %209 = tpu.matmul %9, %208, %cst_65 {dimension_numbers = #tpu.dot_dimension_numbers<[1], [0], [0], [1], [0, 0, 1, 1], [], []>} : vector<8x8xf32>, vector<8x48xf32>, vector<8x48xf32> -> vector<8x48xf32>
    %210 = arith.addf %207, %209 : vector<8x48xf32>
    %211 = vector.extract_strided_slice %205 {offsets = [0, 8], sizes = [8, 48], strides = [1, 1]} : vector<8x56xf32> to vector<8x48xf32>
    %cst_66 = arith.constant dense<0.000000e+00> : vector<8x48xf32>
    %212 = tpu.matmul %11, %211, %cst_66 {dimension_numbers = #tpu.dot_dimension_numbers<[1], [0], [0], [1], [0, 0, 1, 1], [], []>} : vector<8x8xf32>, vector<8x48xf32>, vector<8x48xf32> -> vector<8x48xf32>
    %213 = arith.addf %210, %212 : vector<8x48xf32>
    %214 = vector.broadcast %13 : vector<8x1xf32> to vector<8x48xf32>
    %215 = arith.addf %213, %214 : vector<8x48xf32>
    %cst_67 = arith.constant 0.000000e+00 : f32
    %216 = vector.broadcast %cst_67 : f32 to vector<8x48xf32>
    %217 = arith.maximumf %215, %216 : vector<8x48xf32>
    %c4_68 = arith.constant 4 : index
    %c0_69 = arith.constant 0 : index
    %c0_70 = arith.constant 0 : index
    %218 = vector.load %arg8[%c4_68, %c0_69, %c0_70] : memref<8x8x48xf32, #tpu.memory_space<vmem>>, vector<1x8x48xf32>
    %219 = vector.shape_cast %218 : vector<1x8x48xf32> to vector<8x48xf32>
    %220 = vector.shape_cast %217 : vector<8x48xf32> to vector<1x8x48xf32>
    tpu.vector_store %arg8[%c4_68, %c0_69, %c0_70], %220 {strides = array<i32>} : memref<8x8x48xf32, #tpu.memory_space<vmem>>, vector<1x8x48xf32>,
    %221 = vector.extract_strided_slice %217 {offsets = [0, 0], sizes = [1, 48], strides = [1, 1]} : vector<8x48xf32> to vector<1x48xf32>
    %222 = vector.extract_strided_slice %217 {offsets = [1, 0], sizes = [1, 48], strides = [1, 1]} : vector<8x48xf32> to vector<1x48xf32>
    %223 = vector.extract_strided_slice %217 {offsets = [2, 0], sizes = [1, 48], strides = [1, 1]} : vector<8x48xf32> to vector<1x48xf32>
    %224 = vector.extract_strided_slice %217 {offsets = [3, 0], sizes = [1, 48], strides = [1, 1]} : vector<8x48xf32> to vector<1x48xf32>
    %225 = vector.extract_strided_slice %217 {offsets = [4, 0], sizes = [1, 48], strides = [1, 1]} : vector<8x48xf32> to vector<1x48xf32>
    %226 = vector.extract_strided_slice %217 {offsets = [5, 0], sizes = [1, 48], strides = [1, 1]} : vector<8x48xf32> to vector<1x48xf32>
    %227 = vector.extract_strided_slice %217 {offsets = [6, 0], sizes = [1, 48], strides = [1, 1]} : vector<8x48xf32> to vector<1x48xf32>
    %228 = vector.extract_strided_slice %217 {offsets = [7, 0], sizes = [1, 48], strides = [1, 1]} : vector<8x48xf32> to vector<1x48xf32>
    %c5 = arith.constant 5 : index
    %c0_71 = arith.constant 0 : index
    %c0_72 = arith.constant 0 : index
    %229 = vector.load %arg1[%c5, %c0_71, %c0_72] : memref<8x1x64xf32, #tpu.memory_space<vmem>>, vector<1x1x64xf32>
    %230 = vector.shape_cast %229 : vector<1x1x64xf32> to vector<1x64xf32>
    %231 = vector.extract_strided_slice %230 {offsets = [0, 0], sizes = [1, 56], strides = [1, 1]} : vector<1x64xf32> to vector<1x56xf32>
    %232 = vector.broadcast %1 : vector<8x1xf32> to vector<8x56xf32>
    %233 = vector.broadcast %231 : vector<1x56xf32> to vector<8x56xf32>
    %234 = arith.mulf %232, %233 : vector<8x56xf32>
    %235 = vector.extract_strided_slice %230 {offsets = [0, 4], sizes = [1, 56], strides = [1, 1]} : vector<1x64xf32> to vector<1x56xf32>
    %236 = vector.broadcast %3 : vector<8x1xf32> to vector<8x56xf32>
    %237 = vector.broadcast %235 : vector<1x56xf32> to vector<8x56xf32>
    %238 = arith.mulf %236, %237 : vector<8x56xf32>
    %239 = arith.addf %234, %238 : vector<8x56xf32>
    %240 = vector.extract_strided_slice %230 {offsets = [0, 8], sizes = [1, 56], strides = [1, 1]} : vector<1x64xf32> to vector<1x56xf32>
    %241 = vector.broadcast %5 : vector<8x1xf32> to vector<8x56xf32>
    %242 = vector.broadcast %240 : vector<1x56xf32> to vector<8x56xf32>
    %243 = arith.mulf %241, %242 : vector<8x56xf32>
    %244 = arith.addf %239, %243 : vector<8x56xf32>
    %245 = vector.broadcast %12 : vector<8x1xf32> to vector<8x56xf32>
    %246 = arith.addf %244, %245 : vector<8x56xf32>
    %cst_73 = arith.constant 0.000000e+00 : f32
    %247 = vector.broadcast %cst_73 : f32 to vector<8x56xf32>
    %248 = arith.maximumf %246, %247 : vector<8x56xf32>
    %249 = vector.extract_strided_slice %248 {offsets = [0, 0], sizes = [8, 48], strides = [1, 1]} : vector<8x56xf32> to vector<8x48xf32>
    %cst_74 = arith.constant dense<0.000000e+00> : vector<8x48xf32>
    %250 = tpu.matmul %7, %249, %cst_74 {dimension_numbers = #tpu.dot_dimension_numbers<[1], [0], [0], [1], [0, 0, 1, 1], [], []>} : vector<8x8xf32>, vector<8x48xf32>, vector<8x48xf32> -> vector<8x48xf32>
    %251 = vector.extract_strided_slice %248 {offsets = [0, 4], sizes = [8, 48], strides = [1, 1]} : vector<8x56xf32> to vector<8x48xf32>
    %cst_75 = arith.constant dense<0.000000e+00> : vector<8x48xf32>
    %252 = tpu.matmul %9, %251, %cst_75 {dimension_numbers = #tpu.dot_dimension_numbers<[1], [0], [0], [1], [0, 0, 1, 1], [], []>} : vector<8x8xf32>, vector<8x48xf32>, vector<8x48xf32> -> vector<8x48xf32>
    %253 = arith.addf %250, %252 : vector<8x48xf32>
    %254 = vector.extract_strided_slice %248 {offsets = [0, 8], sizes = [8, 48], strides = [1, 1]} : vector<8x56xf32> to vector<8x48xf32>
    %cst_76 = arith.constant dense<0.000000e+00> : vector<8x48xf32>
    %255 = tpu.matmul %11, %254, %cst_76 {dimension_numbers = #tpu.dot_dimension_numbers<[1], [0], [0], [1], [0, 0, 1, 1], [], []>} : vector<8x8xf32>, vector<8x48xf32>, vector<8x48xf32> -> vector<8x48xf32>
    %256 = arith.addf %253, %255 : vector<8x48xf32>
    %257 = vector.broadcast %13 : vector<8x1xf32> to vector<8x48xf32>
    %258 = arith.addf %256, %257 : vector<8x48xf32>
    %cst_77 = arith.constant 0.000000e+00 : f32
    %259 = vector.broadcast %cst_77 : f32 to vector<8x48xf32>
    %260 = arith.maximumf %258, %259 : vector<8x48xf32>
    %c5_78 = arith.constant 5 : index
    %c0_79 = arith.constant 0 : index
    %c0_80 = arith.constant 0 : index
    %261 = vector.load %arg8[%c5_78, %c0_79, %c0_80] : memref<8x8x48xf32, #tpu.memory_space<vmem>>, vector<1x8x48xf32>
    %262 = vector.shape_cast %261 : vector<1x8x48xf32> to vector<8x48xf32>
    %263 = vector.shape_cast %260 : vector<8x48xf32> to vector<1x8x48xf32>
    tpu.vector_store %arg8[%c5_78, %c0_79, %c0_80], %263 {strides = array<i32>} : memref<8x8x48xf32, #tpu.memory_space<vmem>>, vector<1x8x48xf32>,
    %264 = vector.extract_strided_slice %260 {offsets = [0, 0], sizes = [1, 48], strides = [1, 1]} : vector<8x48xf32> to vector<1x48xf32>
    %265 = vector.extract_strided_slice %260 {offsets = [1, 0], sizes = [1, 48], strides = [1, 1]} : vector<8x48xf32> to vector<1x48xf32>
    %266 = vector.extract_strided_slice %260 {offsets = [2, 0], sizes = [1, 48], strides = [1, 1]} : vector<8x48xf32> to vector<1x48xf32>
    %267 = vector.extract_strided_slice %260 {offsets = [3, 0], sizes = [1, 48], strides = [1, 1]} : vector<8x48xf32> to vector<1x48xf32>
    %268 = vector.extract_strided_slice %260 {offsets = [4, 0], sizes = [1, 48], strides = [1, 1]} : vector<8x48xf32> to vector<1x48xf32>
    %269 = vector.extract_strided_slice %260 {offsets = [5, 0], sizes = [1, 48], strides = [1, 1]} : vector<8x48xf32> to vector<1x48xf32>
    %270 = vector.extract_strided_slice %260 {offsets = [6, 0], sizes = [1, 48], strides = [1, 1]} : vector<8x48xf32> to vector<1x48xf32>
    %271 = vector.extract_strided_slice %260 {offsets = [7, 0], sizes = [1, 48], strides = [1, 1]} : vector<8x48xf32> to vector<1x48xf32>
    %c6 = arith.constant 6 : index
    %c0_81 = arith.constant 0 : index
    %c0_82 = arith.constant 0 : index
    %272 = vector.load %arg1[%c6, %c0_81, %c0_82] : memref<8x1x64xf32, #tpu.memory_space<vmem>>, vector<1x1x64xf32>
    %273 = vector.shape_cast %272 : vector<1x1x64xf32> to vector<1x64xf32>
    %274 = vector.extract_strided_slice %273 {offsets = [0, 0], sizes = [1, 56], strides = [1, 1]} : vector<1x64xf32> to vector<1x56xf32>
    %275 = vector.broadcast %1 : vector<8x1xf32> to vector<8x56xf32>
    %276 = vector.broadcast %274 : vector<1x56xf32> to vector<8x56xf32>
    %277 = arith.mulf %275, %276 : vector<8x56xf32>
    %278 = vector.extract_strided_slice %273 {offsets = [0, 4], sizes = [1, 56], strides = [1, 1]} : vector<1x64xf32> to vector<1x56xf32>
    %279 = vector.broadcast %3 : vector<8x1xf32> to vector<8x56xf32>
    %280 = vector.broadcast %278 : vector<1x56xf32> to vector<8x56xf32>
    %281 = arith.mulf %279, %280 : vector<8x56xf32>
    %282 = arith.addf %277, %281 : vector<8x56xf32>
    %283 = vector.extract_strided_slice %273 {offsets = [0, 8], sizes = [1, 56], strides = [1, 1]} : vector<1x64xf32> to vector<1x56xf32>
    %284 = vector.broadcast %5 : vector<8x1xf32> to vector<8x56xf32>
    %285 = vector.broadcast %283 : vector<1x56xf32> to vector<8x56xf32>
    %286 = arith.mulf %284, %285 : vector<8x56xf32>
    %287 = arith.addf %282, %286 : vector<8x56xf32>
    %288 = vector.broadcast %12 : vector<8x1xf32> to vector<8x56xf32>
    %289 = arith.addf %287, %288 : vector<8x56xf32>
    %cst_83 = arith.constant 0.000000e+00 : f32
    %290 = vector.broadcast %cst_83 : f32 to vector<8x56xf32>
    %291 = arith.maximumf %289, %290 : vector<8x56xf32>
    %292 = vector.extract_strided_slice %291 {offsets = [0, 0], sizes = [8, 48], strides = [1, 1]} : vector<8x56xf32> to vector<8x48xf32>
    %cst_84 = arith.constant dense<0.000000e+00> : vector<8x48xf32>
    %293 = tpu.matmul %7, %292, %cst_84 {dimension_numbers = #tpu.dot_dimension_numbers<[1], [0], [0], [1], [0, 0, 1, 1], [], []>} : vector<8x8xf32>, vector<8x48xf32>, vector<8x48xf32> -> vector<8x48xf32>
    %294 = vector.extract_strided_slice %291 {offsets = [0, 4], sizes = [8, 48], strides = [1, 1]} : vector<8x56xf32> to vector<8x48xf32>
    %cst_85 = arith.constant dense<0.000000e+00> : vector<8x48xf32>
    %295 = tpu.matmul %9, %294, %cst_85 {dimension_numbers = #tpu.dot_dimension_numbers<[1], [0], [0], [1], [0, 0, 1, 1], [], []>} : vector<8x8xf32>, vector<8x48xf32>, vector<8x48xf32> -> vector<8x48xf32>
    %296 = arith.addf %293, %295 : vector<8x48xf32>
    %297 = vector.extract_strided_slice %291 {offsets = [0, 8], sizes = [8, 48], strides = [1, 1]} : vector<8x56xf32> to vector<8x48xf32>
    %cst_86 = arith.constant dense<0.000000e+00> : vector<8x48xf32>
    %298 = tpu.matmul %11, %297, %cst_86 {dimension_numbers = #tpu.dot_dimension_numbers<[1], [0], [0], [1], [0, 0, 1, 1], [], []>} : vector<8x8xf32>, vector<8x48xf32>, vector<8x48xf32> -> vector<8x48xf32>
    %299 = arith.addf %296, %298 : vector<8x48xf32>
    %300 = vector.broadcast %13 : vector<8x1xf32> to vector<8x48xf32>
    %301 = arith.addf %299, %300 : vector<8x48xf32>
    %cst_87 = arith.constant 0.000000e+00 : f32
    %302 = vector.broadcast %cst_87 : f32 to vector<8x48xf32>
    %303 = arith.maximumf %301, %302 : vector<8x48xf32>
    %c6_88 = arith.constant 6 : index
    %c0_89 = arith.constant 0 : index
    %c0_90 = arith.constant 0 : index
    %304 = vector.load %arg8[%c6_88, %c0_89, %c0_90] : memref<8x8x48xf32, #tpu.memory_space<vmem>>, vector<1x8x48xf32>
    %305 = vector.shape_cast %304 : vector<1x8x48xf32> to vector<8x48xf32>
    %306 = vector.shape_cast %303 : vector<8x48xf32> to vector<1x8x48xf32>
    tpu.vector_store %arg8[%c6_88, %c0_89, %c0_90], %306 {strides = array<i32>} : memref<8x8x48xf32, #tpu.memory_space<vmem>>, vector<1x8x48xf32>,
    %307 = vector.extract_strided_slice %303 {offsets = [0, 0], sizes = [1, 48], strides = [1, 1]} : vector<8x48xf32> to vector<1x48xf32>
    %308 = vector.extract_strided_slice %303 {offsets = [1, 0], sizes = [1, 48], strides = [1, 1]} : vector<8x48xf32> to vector<1x48xf32>
    %309 = vector.extract_strided_slice %303 {offsets = [2, 0], sizes = [1, 48], strides = [1, 1]} : vector<8x48xf32> to vector<1x48xf32>
    %310 = vector.extract_strided_slice %303 {offsets = [3, 0], sizes = [1, 48], strides = [1, 1]} : vector<8x48xf32> to vector<1x48xf32>
    %311 = vector.extract_strided_slice %303 {offsets = [4, 0], sizes = [1, 48], strides = [1, 1]} : vector<8x48xf32> to vector<1x48xf32>
    %312 = vector.extract_strided_slice %303 {offsets = [5, 0], sizes = [1, 48], strides = [1, 1]} : vector<8x48xf32> to vector<1x48xf32>
    %313 = vector.extract_strided_slice %303 {offsets = [6, 0], sizes = [1, 48], strides = [1, 1]} : vector<8x48xf32> to vector<1x48xf32>
    %314 = vector.extract_strided_slice %303 {offsets = [7, 0], sizes = [1, 48], strides = [1, 1]} : vector<8x48xf32> to vector<1x48xf32>
    %c7 = arith.constant 7 : index
    %c0_91 = arith.constant 0 : index
    %c0_92 = arith.constant 0 : index
    %315 = vector.load %arg1[%c7, %c0_91, %c0_92] : memref<8x1x64xf32, #tpu.memory_space<vmem>>, vector<1x1x64xf32>
    %316 = vector.shape_cast %315 : vector<1x1x64xf32> to vector<1x64xf32>
    %317 = vector.extract_strided_slice %316 {offsets = [0, 0], sizes = [1, 56], strides = [1, 1]} : vector<1x64xf32> to vector<1x56xf32>
    %318 = vector.broadcast %1 : vector<8x1xf32> to vector<8x56xf32>
    %319 = vector.broadcast %317 : vector<1x56xf32> to vector<8x56xf32>
    %320 = arith.mulf %318, %319 : vector<8x56xf32>
    %321 = vector.extract_strided_slice %316 {offsets = [0, 4], sizes = [1, 56], strides = [1, 1]} : vector<1x64xf32> to vector<1x56xf32>
    %322 = vector.broadcast %3 : vector<8x1xf32> to vector<8x56xf32>
    %323 = vector.broadcast %321 : vector<1x56xf32> to vector<8x56xf32>
    %324 = arith.mulf %322, %323 : vector<8x56xf32>
    %325 = arith.addf %320, %324 : vector<8x56xf32>
    %326 = vector.extract_strided_slice %316 {offsets = [0, 8], sizes = [1, 56], strides = [1, 1]} : vector<1x64xf32> to vector<1x56xf32>
    %327 = vector.broadcast %5 : vector<8x1xf32> to vector<8x56xf32>
    %328 = vector.broadcast %326 : vector<1x56xf32> to vector<8x56xf32>
    %329 = arith.mulf %327, %328 : vector<8x56xf32>
    %330 = arith.addf %325, %329 : vector<8x56xf32>
    %331 = vector.broadcast %12 : vector<8x1xf32> to vector<8x56xf32>
    %332 = arith.addf %330, %331 : vector<8x56xf32>
    %cst_93 = arith.constant 0.000000e+00 : f32
    %333 = vector.broadcast %cst_93 : f32 to vector<8x56xf32>
    %334 = arith.maximumf %332, %333 : vector<8x56xf32>
    %335 = vector.extract_strided_slice %334 {offsets = [0, 0], sizes = [8, 48], strides = [1, 1]} : vector<8x56xf32> to vector<8x48xf32>
    %cst_94 = arith.constant dense<0.000000e+00> : vector<8x48xf32>
    %336 = tpu.matmul %7, %335, %cst_94 {dimension_numbers = #tpu.dot_dimension_numbers<[1], [0], [0], [1], [0, 0, 1, 1], [], []>} : vector<8x8xf32>, vector<8x48xf32>, vector<8x48xf32> -> vector<8x48xf32>
    %337 = vector.extract_strided_slice %334 {offsets = [0, 4], sizes = [8, 48], strides = [1, 1]} : vector<8x56xf32> to vector<8x48xf32>
    %cst_95 = arith.constant dense<0.000000e+00> : vector<8x48xf32>
    %338 = tpu.matmul %9, %337, %cst_95 {dimension_numbers = #tpu.dot_dimension_numbers<[1], [0], [0], [1], [0, 0, 1, 1], [], []>} : vector<8x8xf32>, vector<8x48xf32>, vector<8x48xf32> -> vector<8x48xf32>
    %339 = arith.addf %336, %338 : vector<8x48xf32>
    %340 = vector.extract_strided_slice %334 {offsets = [0, 8], sizes = [8, 48], strides = [1, 1]} : vector<8x56xf32> to vector<8x48xf32>
    %cst_96 = arith.constant dense<0.000000e+00> : vector<8x48xf32>
    %341 = tpu.matmul %11, %340, %cst_96 {dimension_numbers = #tpu.dot_dimension_numbers<[1], [0], [0], [1], [0, 0, 1, 1], [], []>} : vector<8x8xf32>, vector<8x48xf32>, vector<8x48xf32> -> vector<8x48xf32>
    %342 = arith.addf %339, %341 : vector<8x48xf32>
    %343 = vector.broadcast %13 : vector<8x1xf32> to vector<8x48xf32>
    %344 = arith.addf %342, %343 : vector<8x48xf32>
    %cst_97 = arith.constant 0.000000e+00 : f32
    %345 = vector.broadcast %cst_97 : f32 to vector<8x48xf32>
    %346 = arith.maximumf %344, %345 : vector<8x48xf32>
    %c7_98 = arith.constant 7 : index
    %c0_99 = arith.constant 0 : index
    %c0_100 = arith.constant 0 : index
    %347 = vector.load %arg8[%c7_98, %c0_99, %c0_100] : memref<8x8x48xf32, #tpu.memory_space<vmem>>, vector<1x8x48xf32>
    %348 = vector.shape_cast %347 : vector<1x8x48xf32> to vector<8x48xf32>
    %349 = vector.shape_cast %346 : vector<8x48xf32> to vector<1x8x48xf32>
    tpu.vector_store %arg8[%c7_98, %c0_99, %c0_100], %349 {strides = array<i32>} : memref<8x8x48xf32, #tpu.memory_space<vmem>>, vector<1x8x48xf32>,
    %350 = vector.extract_strided_slice %346 {offsets = [0, 0], sizes = [1, 48], strides = [1, 1]} : vector<8x48xf32> to vector<1x48xf32>
    %351 = vector.extract_strided_slice %346 {offsets = [1, 0], sizes = [1, 48], strides = [1, 1]} : vector<8x48xf32> to vector<1x48xf32>
    %352 = vector.extract_strided_slice %346 {offsets = [2, 0], sizes = [1, 48], strides = [1, 1]} : vector<8x48xf32> to vector<1x48xf32>
    %353 = vector.extract_strided_slice %346 {offsets = [3, 0], sizes = [1, 48], strides = [1, 1]} : vector<8x48xf32> to vector<1x48xf32>
    %354 = vector.extract_strided_slice %346 {offsets = [4, 0], sizes = [1, 48], strides = [1, 1]} : vector<8x48xf32> to vector<1x48xf32>
    %355 = vector.extract_strided_slice %346 {offsets = [5, 0], sizes = [1, 48], strides = [1, 1]} : vector<8x48xf32> to vector<1x48xf32>
    %356 = vector.extract_strided_slice %346 {offsets = [6, 0], sizes = [1, 48], strides = [1, 1]} : vector<8x48xf32> to vector<1x48xf32>
    %357 = vector.extract_strided_slice %346 {offsets = [7, 0], sizes = [1, 48], strides = [1, 1]} : vector<8x48xf32> to vector<1x48xf32>
    %358 = tpu.concatenate %49, %92, %135, %178, %221, %264, %307, %350 in 0 : vector<1x48xf32>, vector<1x48xf32>, vector<1x48xf32>, vector<1x48xf32>, vector<1x48xf32>, vector<1x48xf32>, vector<1x48xf32>, vector<1x48xf32> -> vector<8x48xf32>
    %c0_101 = arith.constant 0 : index
    %c0_102 = arith.constant 0 : index
    %c0_103 = arith.constant 0 : index
    %359 = vector.load %arg6[%c0_101, %c0_102, %c0_103] : memref<8x48x128xf32, #tpu.memory_space<vmem>>, vector<1x48x128xf32>
    %360 = vector.shape_cast %359 : vector<1x48x128xf32> to vector<48x128xf32>
    %cst_104 = arith.constant dense<0.000000e+00> : vector<8x128xf32>
    %361 = tpu.matmul %358, %360, %cst_104 {dimension_numbers = #tpu.dot_dimension_numbers<[1], [0], [0], [1], [0, 0, 1, 1], [], []>} : vector<8x48xf32>, vector<48x128xf32>, vector<8x128xf32> -> vector<8x128xf32>
    %362 = tpu.concatenate %50, %93, %136, %179, %222, %265, %308, %351 in 0 : vector<1x48xf32>, vector<1x48xf32>, vector<1x48xf32>, vector<1x48xf32>, vector<1x48xf32>, vector<1x48xf32>, vector<1x48xf32>, vector<1x48xf32> -> vector<8x48xf32>
    %c1_105 = arith.constant 1 : index
    %c0_106 = arith.constant 0 : index
    %c0_107 = arith.constant 0 : index
    %363 = vector.load %arg6[%c1_105, %c0_106, %c0_107] : memref<8x48x128xf32, #tpu.memory_space<vmem>>, vector<1x48x128xf32>
    %364 = vector.shape_cast %363 : vector<1x48x128xf32> to vector<48x128xf32>
    %cst_108 = arith.constant dense<0.000000e+00> : vector<8x128xf32>
    %365 = tpu.matmul %362, %364, %cst_108 {dimension_numbers = #tpu.dot_dimension_numbers<[1], [0], [0], [1], [0, 0, 1, 1], [], []>} : vector<8x48xf32>, vector<48x128xf32>, vector<8x128xf32> -> vector<8x128xf32>
    %366 = arith.addf %361, %365 : vector<8x128xf32>
    %367 = tpu.concatenate %51, %94, %137, %180, %223, %266, %309, %352 in 0 : vector<1x48xf32>, vector<1x48xf32>, vector<1x48xf32>, vector<1x48xf32>, vector<1x48xf32>, vector<1x48xf32>, vector<1x48xf32>, vector<1x48xf32> -> vector<8x48xf32>
    %c2_109 = arith.constant 2 : index
    %c0_110 = arith.constant 0 : index
    %c0_111 = arith.constant 0 : index
    %368 = vector.load %arg6[%c2_109, %c0_110, %c0_111] : memref<8x48x128xf32, #tpu.memory_space<vmem>>, vector<1x48x128xf32>
    %369 = vector.shape_cast %368 : vector<1x48x128xf32> to vector<48x128xf32>
    %cst_112 = arith.constant dense<0.000000e+00> : vector<8x128xf32>
    %370 = tpu.matmul %367, %369, %cst_112 {dimension_numbers = #tpu.dot_dimension_numbers<[1], [0], [0], [1], [0, 0, 1, 1], [], []>} : vector<8x48xf32>, vector<48x128xf32>, vector<8x128xf32> -> vector<8x128xf32>
    %371 = arith.addf %366, %370 : vector<8x128xf32>
    %372 = tpu.concatenate %52, %95, %138, %181, %224, %267, %310, %353 in 0 : vector<1x48xf32>, vector<1x48xf32>, vector<1x48xf32>, vector<1x48xf32>, vector<1x48xf32>, vector<1x48xf32>, vector<1x48xf32>, vector<1x48xf32> -> vector<8x48xf32>
    %c3_113 = arith.constant 3 : index
    %c0_114 = arith.constant 0 : index
    %c0_115 = arith.constant 0 : index
    %373 = vector.load %arg6[%c3_113, %c0_114, %c0_115] : memref<8x48x128xf32, #tpu.memory_space<vmem>>, vector<1x48x128xf32>
    %374 = vector.shape_cast %373 : vector<1x48x128xf32> to vector<48x128xf32>
    %cst_116 = arith.constant dense<0.000000e+00> : vector<8x128xf32>
    %375 = tpu.matmul %372, %374, %cst_116 {dimension_numbers = #tpu.dot_dimension_numbers<[1], [0], [0], [1], [0, 0, 1, 1], [], []>} : vector<8x48xf32>, vector<48x128xf32>, vector<8x128xf32> -> vector<8x128xf32>
    %376 = arith.addf %371, %375 : vector<8x128xf32>
    %377 = tpu.concatenate %53, %96, %139, %182, %225, %268, %311, %354 in 0 : vector<1x48xf32>, vector<1x48xf32>, vector<1x48xf32>, vector<1x48xf32>, vector<1x48xf32>, vector<1x48xf32>, vector<1x48xf32>, vector<1x48xf32> -> vector<8x48xf32>
    %c4_117 = arith.constant 4 : index
    %c0_118 = arith.constant 0 : index
    %c0_119 = arith.constant 0 : index
    %378 = vector.load %arg6[%c4_117, %c0_118, %c0_119] : memref<8x48x128xf32, #tpu.memory_space<vmem>>, vector<1x48x128xf32>
    %379 = vector.shape_cast %378 : vector<1x48x128xf32> to vector<48x128xf32>
    %cst_120 = arith.constant dense<0.000000e+00> : vector<8x128xf32>
    %380 = tpu.matmul %377, %379, %cst_120 {dimension_numbers = #tpu.dot_dimension_numbers<[1], [0], [0], [1], [0, 0, 1, 1], [], []>} : vector<8x48xf32>, vector<48x128xf32>, vector<8x128xf32> -> vector<8x128xf32>
    %381 = arith.addf %376, %380 : vector<8x128xf32>
    %382 = tpu.concatenate %54, %97, %140, %183, %226, %269, %312, %355 in 0 : vector<1x48xf32>, vector<1x48xf32>, vector<1x48xf32>, vector<1x48xf32>, vector<1x48xf32>, vector<1x48xf32>, vector<1x48xf32>, vector<1x48xf32> -> vector<8x48xf32>
    %c5_121 = arith.constant 5 : index
    %c0_122 = arith.constant 0 : index
    %c0_123 = arith.constant 0 : index
    %383 = vector.load %arg6[%c5_121, %c0_122, %c0_123] : memref<8x48x128xf32, #tpu.memory_space<vmem>>, vector<1x48x128xf32>
    %384 = vector.shape_cast %383 : vector<1x48x128xf32> to vector<48x128xf32>
    %cst_124 = arith.constant dense<0.000000e+00> : vector<8x128xf32>
    %385 = tpu.matmul %382, %384, %cst_124 {dimension_numbers = #tpu.dot_dimension_numbers<[1], [0], [0], [1], [0, 0, 1, 1], [], []>} : vector<8x48xf32>, vector<48x128xf32>, vector<8x128xf32> -> vector<8x128xf32>
    %386 = arith.addf %381, %385 : vector<8x128xf32>
    %387 = tpu.concatenate %55, %98, %141, %184, %227, %270, %313, %356 in 0 : vector<1x48xf32>, vector<1x48xf32>, vector<1x48xf32>, vector<1x48xf32>, vector<1x48xf32>, vector<1x48xf32>, vector<1x48xf32>, vector<1x48xf32> -> vector<8x48xf32>
    %c6_125 = arith.constant 6 : index
    %c0_126 = arith.constant 0 : index
    %c0_127 = arith.constant 0 : index
    %388 = vector.load %arg6[%c6_125, %c0_126, %c0_127] : memref<8x48x128xf32, #tpu.memory_space<vmem>>, vector<1x48x128xf32>
    %389 = vector.shape_cast %388 : vector<1x48x128xf32> to vector<48x128xf32>
    %cst_128 = arith.constant dense<0.000000e+00> : vector<8x128xf32>
    %390 = tpu.matmul %387, %389, %cst_128 {dimension_numbers = #tpu.dot_dimension_numbers<[1], [0], [0], [1], [0, 0, 1, 1], [], []>} : vector<8x48xf32>, vector<48x128xf32>, vector<8x128xf32> -> vector<8x128xf32>
    %391 = arith.addf %386, %390 : vector<8x128xf32>
    %392 = tpu.concatenate %56, %99, %142, %185, %228, %271, %314, %357 in 0 : vector<1x48xf32>, vector<1x48xf32>, vector<1x48xf32>, vector<1x48xf32>, vector<1x48xf32>, vector<1x48xf32>, vector<1x48xf32>, vector<1x48xf32> -> vector<8x48xf32>
    %c7_129 = arith.constant 7 : index
    %c0_130 = arith.constant 0 : index
    %c0_131 = arith.constant 0 : index
    %393 = vector.load %arg6[%c7_129, %c0_130, %c0_131] : memref<8x48x128xf32, #tpu.memory_space<vmem>>, vector<1x48x128xf32>
    %394 = vector.shape_cast %393 : vector<1x48x128xf32> to vector<48x128xf32>
    %cst_132 = arith.constant dense<0.000000e+00> : vector<8x128xf32>
    %395 = tpu.matmul %392, %394, %cst_132 {dimension_numbers = #tpu.dot_dimension_numbers<[1], [0], [0], [1], [0, 0, 1, 1], [], []>} : vector<8x48xf32>, vector<48x128xf32>, vector<8x128xf32> -> vector<8x128xf32>
    %396 = arith.addf %391, %395 : vector<8x128xf32>
    %c0_133 = arith.constant 0 : index
    %c0_134 = arith.constant 0 : index
    %397 = vector.load %arg7[%c0_133, %c0_134] : memref<1x128xf32, #tpu.memory_space<vmem>>, vector<1x128xf32>
    %398 = vector.broadcast %397 : vector<1x128xf32> to vector<8x128xf32>
    %399 = arith.addf %396, %398 : vector<8x128xf32>
    %c0_135 = arith.constant 0 : index
    %c0_136 = arith.constant 0 : index
    %400 = vector.load %arg9[%c0_135, %c0_136] : memref<8x128xf32, #tpu.memory_space<vmem>>, vector<8x128xf32>
    tpu.vector_store %arg9[%c0_135, %c0_136], %399 {strides = array<i32>} : memref<8x128xf32, #tpu.memory_space<vmem>>, vector<8x128xf32>,
    return
  }
  func.func @transform_0(%arg0: i32) -> (i32, i32, i32) {
    %c0_i32 = arith.constant 0 : i32
    %c0_i32_0 = arith.constant 0 : i32
    %c0_i32_1 = arith.constant 0 : i32
    return %arg0, %c0_i32, %c0_i32_0 : i32, i32, i32
  }
  func.func @transform_1(%arg0: i32) -> (i32, i32, i32) {
    %c0_i32 = arith.constant 0 : i32
    %c0_i32_0 = arith.constant 0 : i32
    %c0_i32_1 = arith.constant 0 : i32
    %c0_i32_2 = arith.constant 0 : i32
    return %c0_i32, %c0_i32_0, %c0_i32_1 : i32, i32, i32
  }
  func.func @transform_2(%arg0: i32) -> (i32, i32) {
    %c0_i32 = arith.constant 0 : i32
    %c0_i32_0 = arith.constant 0 : i32
    %c0_i32_1 = arith.constant 0 : i32
    return %c0_i32, %c0_i32_0 : i32, i32
  }
  func.func @transform_3(%arg0: i32) -> (i32, i32, i32) {
    %c0_i32 = arith.constant 0 : i32
    %c0_i32_0 = arith.constant 0 : i32
    %c0_i32_1 = arith.constant 0 : i32
    %c0_i32_2 = arith.constant 0 : i32
    return %c0_i32, %c0_i32_0, %c0_i32_1 : i32, i32, i32
  }
  func.func @transform_4(%arg0: i32) -> (i32, i32) {
    %c0_i32 = arith.constant 0 : i32
    %c0_i32_0 = arith.constant 0 : i32
    %c0_i32_1 = arith.constant 0 : i32
    return %c0_i32, %c0_i32_0 : i32, i32
  }
  func.func @transform_5(%arg0: i32) -> (i32, i32, i32) {
    %c0_i32 = arith.constant 0 : i32
    %c0_i32_0 = arith.constant 0 : i32
    %c0_i32_1 = arith.constant 0 : i32
    %c0_i32_2 = arith.constant 0 : i32
    return %c0_i32, %c0_i32_0, %c0_i32_1 : i32, i32, i32
  }
  func.func @transform_6(%arg0: i32) -> (i32, i32) {
    %c0_i32 = arith.constant 0 : i32
    %c0_i32_0 = arith.constant 0 : i32
    %c0_i32_1 = arith.constant 0 : i32
    return %c0_i32, %c0_i32_0 : i32, i32
  }
  func.func @transform_7(%arg0: i32) -> (i32, i32, i32) {
    %c0_i32 = arith.constant 0 : i32
    %c0_i32_0 = arith.constant 0 : i32
    %c0_i32_1 = arith.constant 0 : i32
    return %arg0, %c0_i32, %c0_i32_0 : i32, i32, i32
  }
  func.func @transform_8(%arg0: i32) -> (i32, i32) {
    %c0_i32 = arith.constant 0 : i32
    %c0_i32_0 = arith.constant 0 : i32
    return %arg0, %c0_i32 : i32, i32
  }
}

</mosaic_0001>

<bundles_post_ra>
// kernel: tcnn_forward.1
= control target key start
LH: loop header
LB: loop body
LE: loop exit
PB: predicated region body
PF: predicated region fallthrough
CT: control target
= control target key end

     0   :  { %s3773_s27 = smov 0   ;;  %s4466_s0 = inlined_call_operand.vmem [shape: f32[16,1,64], index: 0, kind: input, shape index: {}]   ;;  %s4467_s1 = inlined_call_operand.vmem [shape: f32[3,8,1], index: 1, kind: input, shape index: {}]   ;;  %s4468_s2 = inlined_call_operand.vmem [shape: f32[8,1], index: 2, kind: input, shape index: {}]   ;;  %s4469_s3 = inlined_call_operand.vmem [shape: f32[3,8,8], index: 3, kind: input, shape index: {}]   ;;  %s4470_s4 = inlined_call_operand.vmem [shape: f32[8,1], index: 4, kind: input, shape index: {}]   ;;  %s4471_s5 = inlined_call_operand.vmem [shape: f32[8,48,128], index: 5, kind: input, shape index: {}]   ;;  %s4472_s6 = inlined_call_operand.vmem [shape: f32[1,128], index: 6, kind: input, shape index: {}]   ;;  %s4473_s7 = inlined_call_operand.vmem [shape: f32[16,8,48], index: 7, kind: output, shape index: {0}]   ;;  %s4474_s8 = inlined_call_operand.vmem [shape: f32[16,128], index: 8, kind: output, shape index: {1}]  }
   0x1 LB: > { %s3779_s28 = sadd.s32 4294967295, %s3721_s27   ;;  %p3248_p0 = scmp.ge.s32.totalorder %s3721_s27, 1  ;;  %s3721_s27 = sphi %s3773_s27, %s19_s27  }
   0x2   : > { %p265_p1 = scmp.lt.s32.totalorder %s3721_s27, 3 }
   0x4   : > { %p266_p2 = pnand %p3248_p0, %p265_p1 }
   0x5   : > { %s3249_s15 = sshll.u32 (!%p266_p2), %s3779_s28, 3  ;;  %s3725_s19 = smov (!%p266_p2), 124  }
   0x6   : > { %269 = sbr.rel (%p266_p2) target bundleno = 869 (0x365), region = 48  ;;  %p303_p3 = scmp.lt.s32.totalorder (!%p266_p2), %s3249_s15, 15 }
   0x7   : > { %s3726_s20 = smov (!%p266_p2), 120   ;;  %p313_p4 = scmp.lt.s32.totalorder (!%p266_p2), %s3779_s28, 1 }
   0xb   : > { %v3253_v0 = vld [vmem:[%s4467_s1 + $0x8] sm:$0xff]  ;;  %v317_v1 = vld [vmem:[%s4467_s1] sm:$0xff]  ;;  %v3723_v2 = vmov 0   ;;  %v3254_v3 = vld [vmem:[%s4467_s1 + $0x10] sm:$0xff]  ;;  %s4476_s15 = smov (!%p303_p3, %s3249_s15), 15  ;;  %v3724_v7 = vmov 0.0  }
   0xc   : > { %3713 = vset.pattern.permute.xlu0 %v3723_v2  ;;  %3714 = vset.pattern.permute.xlu1 %v3723_v2  ;;  %v327_v4 = vld [vmem:[%s4468_s2] sm:$0xff]  ;;  %s3802_s18 = scalar_lea.vmem %s4466_s0, %s4476_s15  ;;  %vm3727_vm0 = vmmov 0   ;;  %vm375_vm1 = vcmask 64512   ;;  %s3251_s14 = sshll.u32 %s4476_s15, 3  ;;  %vm606_vm2 = vcmask 392192   ;;  %vm2344_vm3 = vcmask 1040384  }
   0xd   : > { %344 = vperm.xlu0 %3713, %v3253_v0   ;;  %332 = vperm.xlu1 %3714, %v317_v1   ;;  %v3257_v5 = vld [vmem:[%s3802_s18] ss:$0 sm:$0xff]  ;;  %v3262_v9 = vld [vmem:[%s3802_s18 + $0x1] ss:$0 sm:$0xff]  ;;  %v3268_v13 = vld [vmem:[%s3802_s18 + $0x2] ss:$0 sm:$0xff] }
   0xe   : > { %3465 = vmatprep.subr.mxu1 %v3724_v7  ;;  %3460 = vmatprep.subr.mxu0 %v3724_v7  ;;  %v3274_v16 = vld [vmem:[%s3802_s18 + $0x3] ss:$0 sm:$0xff]  ;;  %v3816_v19 = vld [vmem:[%s3802_s18 + $0x4] ss:$0 sm:$0xff]  ;;  %v3822_v22 = vld [vmem:[%s3802_s18 + $0x5] ss:$0 sm:$0xff] }
   0xf   : > { %v3829_v25 = vld [vmem:[%s3802_s18 + $0x6] ss:$0 sm:$0xff]  ;;  %v3836_v28 = vld [vmem:[%s3802_s18 + $0x7] ss:$0 sm:$0xff]  ;;  %3462 = vmatprep.mubr.msk.f32.mxu0 %vm3727_vm0, %v3724_v7  ;;  %3467 = vmatprep.mubr.msk.f32.mxu1 %vm3727_vm0, %v3724_v7  ;;  %s4118_s18 = scalar_lea.vmem %s4473_s7, %s3251_s14  ;;  %vm2346_vm4 = vcmask 1041408   ;;  %vm2348_vm5 = vcmask 1042432  }
  0x10   : > { %v3861_v48 = vld [vmem:[%s4469_s3] sm:$0xff]  ;;  %vm2350_vm6 = vcmask 1043456   ;;  %vm2352_vm7 = vcmask 1044480   ;;  %vm2354_vm8 = vcmask 1045504   ;;  %vm2356_vm9 = vcmask 1046528   ;;  %s4478_s28 = smov (!%p313_p4, %s3779_s28), 1 }
  0x11   : > { %355 = vperm.xlu0 %3713, %v3254_v3   ;;  %366 = vperm.xlu1 %3714, %v327_v4   ;;  %s3252_s10 = sshll.u32 %s4478_s28, 3 }
  0x12   : > { %s316_s16 = scalar_lea.vmem %s4474_s8, %s3252_s10 }
  0x88   : > { %v345_v6 = vpop.permute.xlu0 %344  ;;  %v3846_v32 = vpop.permute.xlu1 %332 }
  0x89   : > { %v347_v8 = vmul.f32 %v3257_v5, %v345_v6  ;;  %v617_v12 = vmul.f32 %v3262_v9, %v345_v6  ;;  %v862_v15 = vmul.f32 %v3268_v13, %v345_v6  ;;  %v1107_v18 = vmul.f32 %v3274_v16, %v345_v6 }
  0x8a   : > { %v1352_v21 = vmul.f32 %v3816_v19, %v345_v6  ;;  %v1597_v24 = vmul.f32 %v3822_v22, %v345_v6  ;;  %v1842_v27 = vmul.f32 %v3829_v25, %v345_v6  ;;  %v2087_v30 = vmul.f32 %v3836_v28, %v345_v6 }
  0x8b   : > { %349 = vrot.lane.b32.xlu0 %v347_v8, %s3725_s19  ;;  %v341_v35 = vmul.f32 %v3257_v5, %v3846_v32  ;;  %v616_v40 = vmul.f32 %v3262_v9, %v3846_v32  ;;  %v861_v47 = vmul.f32 %v3268_v13, %v3846_v32  ;;  %v1106_v55 = vmul.f32 %v3274_v16, %v3846_v32 }
  0x8c   : > { %v356_v10 = vpop.permute.xlu0 %355  ;;  %v3852_v33 = vpop.permute.xlu1 %366  ;;  %v1351_v62 = vmul.f32 %v3816_v19, %v3846_v32 }
  0x8d   : > { %v358_v11 = vmul.f32 %v3257_v5, %v356_v10  ;;  %v623_v14 = vmul.f32 %v3262_v9, %v356_v10  ;;  %v868_v17 = vmul.f32 %v3268_v13, %v356_v10  ;;  %v1113_v20 = vmul.f32 %v3274_v16, %v356_v10 }
  0x8e   : > { %v1358_v23 = vmul.f32 %v3816_v19, %v356_v10  ;;  %v1603_v26 = vmul.f32 %v3822_v22, %v356_v10  ;;  %v1848_v29 = vmul.f32 %v3829_v25, %v356_v10  ;;  %v2093_v31 = vmul.f32 %v3836_v28, %v356_v10 }
  0x8f   : > { %360 = vrot.lane.b32.xlu1 %v358_v11, %s3726_s20  ;;  %619 = vrot.lane.b32.xlu0 %v617_v12, %s3725_s19  ;;  %v1596_v5 = vmul.f32 %v3822_v22, %v3846_v32  ;;  %v1841_v13 = vmul.f32 %v3829_v25, %v3846_v32 }
  0x93   : > { %625 = vrot.lane.b32.xlu1 %v623_v14, %s3726_s20  ;;  %864 = vrot.lane.b32.xlu0 %v862_v15, %s3725_s19 }
  0x97   : > { %870 = vrot.lane.b32.xlu1 %v868_v17, %s3726_s20  ;;  %1109 = vrot.lane.b32.xlu0 %v1107_v18, %s3725_s19 }
  0x9b   : > { %1115 = vrot.lane.b32.xlu1 %v1113_v20, %s3726_s20  ;;  %1354 = vrot.lane.b32.xlu0 %v1352_v21, %s3725_s19  ;;  %v2086_v20 = vmul.f32 %v3836_v28, %v3846_v32  ;;  %v328_v28 = vld [vmem:[%s4470_s4] sm:$0xff]  ;;  %v3944_v32 = vld [vmem:[%s4469_s3 + $0x10] sm:$0xff] }
  0x9f   : > { %1360 = vrot.lane.b32.xlu1 %v1358_v23, %s3726_s20  ;;  %1599 = vrot.lane.b32.xlu0 %v1597_v24, %s3725_s19 }
  0xa3   : > { %1605 = vrot.lane.b32.xlu1 %v1603_v26, %s3726_s20  ;;  %1844 = vrot.lane.b32.xlu0 %v1842_v27, %s3725_s19 }
  0xa7   : > { %1850 = vrot.lane.b32.xlu1 %v1848_v29, %s3726_s20  ;;  %2089 = vrot.lane.b32.xlu0 %v2087_v30, %s3725_s19  ;;  %v3934_v29 = vld [vmem:[%s4469_s3 + $0x8] sm:$0xff] }
  0xab   : > { %2095 = vrot.lane.b32.xlu1 %v2093_v31, %s3726_s20 }
  0xfd   : > { %v350_v34 = vpop.permute.xlu0 %349 }
  0xfe   : > { %v352_v36 = vadd.f32 %v350_v34, %v341_v35 }
 0x101   : > { %v361_v37 = vpop.permute.xlu1 %360  ;;  %v620_v38 = vpop.permute.xlu0 %619 }
 0x102   : > { %v363_v39 = vadd.f32 %v361_v37, %v352_v36  ;;  %v622_v42 = vadd.f32 %v620_v38, %v616_v40 }
 0x104   : > { %v369_v41 = vadd.f32 %v3852_v33, %v363_v39 }
 0x105   : > { %v626_v43 = vpop.permute.xlu1 %625  ;;  %v865_v44 = vpop.permute.xlu0 %864 }
 0x106   : > { %v370_v45 = vmax.f32 %v369_v41, 0.0  ;;  %v628_v46 = vadd.f32 %v626_v43, %v622_v42  ;;  %v867_v50 = vadd.f32 %v865_v44, %v861_v47 }
 0x108   : > { %v629_v49 = vadd.f32 %v628_v46, %v3852_v33  ;;  %522 = vrot.lane.b32.xlu1 %v370_v45, %s3726_s20  ;;  %372 = vrot.lane.b32.xlu0 %v370_v45, %s3725_s19 }
 0x109   : > { %3466 = vmatpush3.msra.mxu1 %v370_v45  ;;  %v871_v51 = vpop.permute.xlu1 %870  ;;  %v1110_v52 = vpop.permute.xlu0 %1109 }
 0x10a   : > { %v3866_v53 = vmax.f32 %v629_v49, 0.0  ;;  %v873_v54 = vadd.f32 %v871_v51, %v867_v50  ;;  %3468 = vmatmul.mubr.msk.f32.vlgmr.msra.gmra.mxu1 %vm375_vm1, %v3861_v48  ;;  %3475 = vmatprep.subr.mxu1 %v3724_v7  ;;  %v1112_v57 = vadd.f32 %v1110_v52, %v1106_v55  ;;  %v3308_v50 = vld [vmem:[%s4471_s5 + $0x58] sm:$0xff]  ;;  %v3307_v51 = vld [vmem:[%s4471_s5 + $0x50] sm:$0xff]  ;;  %v2362_v52 = vld [vmem:[%s4471_s5 + $0x20] sm:$0xff] }
 0x10b   : > { %3477 = vmatprep.mubr.msk.f32.mxu1 %vm3727_vm0, %v3724_v7  ;;  %v3305_v55 = vld [vmem:[%s4471_s5 + $0x40] sm:$0xff] }
 0x10c   : > { %v874_v56 = vadd.f32 %v873_v54, %v3852_v33  ;;  %775 = vrot.lane.b32.xlu1 %v3866_v53, %s3726_s20  ;;  %632 = vrot.lane.b32.xlu0 %v3866_v53, %s3725_s19  ;;  %v2361_v54 = vld [vmem:[%s4471_s5 + $0x18] sm:$0xff] }
 0x10d   : > { %v1116_v58 = vpop.permute.xlu1 %1115  ;;  %v1355_v59 = vpop.permute.xlu0 %1354 }
 0x10e   : > { %v3879_v60 = vmax.f32 %v874_v56, 0.0  ;;  %v1118_v61 = vadd.f32 %v1116_v58, %v1112_v57  ;;  %v1357_v0 = vadd.f32 %v1355_v59, %v1351_v62  ;;  %v2360_v56 = vld [vmem:[%s4471_s5 + $0x10] sm:$0xff]  ;;  %v3304_v57 = vld [vmem:[%s4471_s5 + $0x38] sm:$0xff]  ;;  %v2359_v58 = vld [vmem:[%s4471_s5 + $0x8] sm:$0xff] }
 0x10f   : > { %v3303_v59 = vld [vmem:[%s4471_s5 + $0x30] sm:$0xff] }
 0x110   : > { %v1119_v63 = vadd.f32 %v1118_v61, %v3852_v33  ;;  %1020 = vrot.lane.b32.xlu1 %v3879_v60, %s3726_s20  ;;  %877 = vrot.lane.b32.xlu0 %v3879_v60, %s3725_s19 }
 0x111   : > { %v1361_v1 = vpop.permute.xlu1 %1360  ;;  %v1600_v2 = vpop.permute.xlu0 %1599 }
 0x112   : > { %v3888_v3 = vmax.f32 %v1119_v63, 0.0  ;;  %v1363_v4 = vadd.f32 %v1361_v1, %v1357_v0  ;;  %v1602_v8 = vadd.f32 %v1600_v2, %v1596_v5 }
 0x114   : > { %v1364_v6 = vadd.f32 %v1363_v4, %v3852_v33  ;;  %1265 = vrot.lane.b32.xlu1 %v3888_v3, %s3726_s20  ;;  %1122 = vrot.lane.b32.xlu0 %v3888_v3, %s3725_s19 }
 0x115   : > { %v1606_v9 = vpop.permute.xlu1 %1605  ;;  %v1845_v10 = vpop.permute.xlu0 %1844 }
 0x116   : > { %v3897_v11 = vmax.f32 %v1364_v6, 0.0  ;;  %v1608_v12 = vadd.f32 %v1606_v9, %v1602_v8  ;;  %v1847_v15 = vadd.f32 %v1845_v10, %v1841_v13 }
 0x118   : > { %v1609_v14 = vadd.f32 %v1608_v12, %v3852_v33  ;;  %1510 = vrot.lane.b32.xlu1 %v3897_v11, %s3726_s20  ;;  %1367 = vrot.lane.b32.xlu0 %v3897_v11, %s3725_s19 }
 0x119   : > { %v1851_v16 = vpop.permute.xlu1 %1850  ;;  %v2090_v17 = vpop.permute.xlu0 %2089 }
 0x11a   : > { %v3906_v18 = vmax.f32 %v1609_v14, 0.0  ;;  %v1853_v19 = vadd.f32 %v1851_v16, %v1847_v15  ;;  %v2092_v22 = vadd.f32 %v2090_v17, %v2086_v20 }
 0x11c   : > { %v1854_v21 = vadd.f32 %v1853_v19, %v3852_v33  ;;  %1755 = vrot.lane.b32.xlu1 %v3906_v18, %s3726_s20  ;;  %1612 = vrot.lane.b32.xlu0 %v3906_v18, %s3725_s19 }
 0x11d   : > { %v2096_v23 = vpop.permute.xlu1 %2095 }
 0x11e   : > { %v3915_v24 = vmax.f32 %v1854_v21, 0.0  ;;  %v2098_v25 = vadd.f32 %v2096_v23, %v2092_v22 }
 0x120   : > { %v2099_v26 = vadd.f32 %v2098_v25, %v3852_v33  ;;  %2000 = vrot.lane.b32.xlu1 %v3915_v24, %s3726_s20  ;;  %1857 = vrot.lane.b32.xlu0 %v3915_v24, %s3725_s19 }
 0x122   : > { %v3922_v27 = vmax.f32 %v2099_v26, 0.0 }
 0x124   : > { %2245 = vrot.lane.b32.xlu1 %v3922_v27, %s3726_s20  ;;  %2102 = vrot.lane.b32.xlu0 %v3922_v27, %s3725_s19 }
 0x128   : > { %601 = vperm.xlu0 %3713, %v328_v28  }
 0x17a   : > { %v373_v30 = vpop.permute.xlu0 %372  ;;  %v523_v31 = vpop.permute.xlu1 %522 }
 0x17b   : > { %3461 = vmatpush3.msra.mxu0 %v373_v30 }
 0x17c   : > { %3463 = vmatmul.mubr.msk.f32.vlgmr.msra.gmra.mxu0 %vm375_vm1, %v3934_v29  ;;  %3470 = vmatprep.subr.mxu0 %v3724_v7 }
 0x17d   : > { %3471 = vmatpush3.msra.mxu0 %v523_v31  ;;  %3472 = vmatprep.mubr.msk.f32.mxu0 %vm3727_vm0, %v3724_v7 }
 0x17e   : > { %v633_v33 = vpop.permute.xlu0 %632  ;;  %3480 = vmatprep.subr.mxu0 %v3724_v7  ;;  %v776_v34 = vpop.permute.xlu1 %775 }
 0x17f   : > { %3476 = vmatpush3.msra.mxu1 %v633_v33 }
 0x180   : > { %3473 = vmatmul.mubr.msk.f32.vlgmr.msra.gmra.mxu0 %vm375_vm1, %v3944_v32  ;;  %3478 = vmatmul.mubr.msk.f32.vlgmr.msra.gmra.mxu1 %vm375_vm1, %v3934_v29 }
 0x181   : > { %3481 = vmatpush3.msra.mxu0 %v3866_v53  ;;  %3485 = vmatprep.subr.mxu1 %v3724_v7  ;;  %v3306_v53 = vld [vmem:[%s4471_s5 + $0x48] sm:$0xff] }
 0x182   : > { %3486 = vmatpush3.msra.mxu1 %v776_v34  ;;  %v878_v35 = vpop.permute.xlu0 %877  ;;  %3482 = vmatprep.mubr.msk.f32.mxu0 %vm3727_vm0, %v3724_v7  ;;  %v1021_v36 = vpop.permute.xlu1 %1020 }
 0x183   : > { %3487 = vmatprep.mubr.msk.f32.mxu1 %vm3727_vm0, %v3724_v7  ;;  %3490 = vmatprep.subr.mxu0 %v3724_v7 }
 0x184   : > { %3495 = vmatprep.subr.mxu1 %v3724_v7  ;;  %3483 = vmatmul.mubr.msk.f32.vlgmr.msra.gmra.mxu0 %vm375_vm1, %v3861_v48 }
 0x185   : > { %3488 = vmatmul.mubr.msk.f32.vlgmr.msra.gmra.mxu1 %vm375_vm1, %v3944_v32  ;;  %3491 = vmatpush3.msra.mxu0 %v878_v35 }
 0x186   : > { %3496 = vmatpush3.msra.mxu1 %v3879_v60  ;;  %3492 = vmatprep.mubr.msk.f32.mxu0 %vm3727_vm0, %v3724_v7  ;;  %v1123_v37 = vpop.permute.xlu0 %1122  ;;  %v1266_v38 = vpop.permute.xlu1 %1265  ;;  %v2358_v60 = vld [vmem:[%s4471_s5] sm:$0xff] }
 0x187   : > { %3497 = vmatprep.mubr.msk.f32.mxu1 %vm3727_vm0, %v3724_v7  ;;  %3500 = vmatprep.subr.mxu0 %v3724_v7 }
 0x188   : > { %3505 = vmatprep.subr.mxu1 %v3724_v7  ;;  %3493 = vmatmul.mubr.msk.f32.vlgmr.msra.gmra.mxu0 %vm375_vm1, %v3934_v29 }
 0x189   : > { %3498 = vmatmul.mubr.msk.f32.vlgmr.msra.gmra.mxu1 %vm375_vm1, %v3861_v48  ;;  %3501 = vmatpush3.msra.mxu0 %v1021_v36 }
 0x18a   : > { %3506 = vmatpush3.msra.mxu1 %v1123_v37  ;;  %3502 = vmatprep.mubr.msk.f32.mxu0 %vm3727_vm0, %v3724_v7  ;;  %v1368_v39 = vpop.permute.xlu0 %1367  ;;  %v1511_v40 = vpop.permute.xlu1 %1510 }
 0x18b   : > { %3507 = vmatprep.mubr.msk.f32.mxu1 %vm3727_vm0, %v3724_v7  ;;  %3510 = vmatprep.subr.mxu0 %v3724_v7 }
 0x18c   : > { %3515 = vmatprep.subr.mxu1 %v3724_v7  ;;  %3503 = vmatmul.mubr.msk.f32.vlgmr.msra.gmra.mxu0 %vm375_vm1, %v3944_v32 }
 0x18d   : > { %3508 = vmatmul.mubr.msk.f32.vlgmr.msra.gmra.mxu1 %vm375_vm1, %v3934_v29  ;;  %3511 = vmatpush3.msra.mxu0 %v3888_v3 }
 0x18e   : > { %3516 = vmatpush3.msra.mxu1 %v1266_v38  ;;  %3512 = vmatprep.mubr.msk.f32.mxu0 %vm3727_vm0, %v3724_v7  ;;  %v1613_v41 = vpop.permute.xlu0 %1612  ;;  %v1756_v42 = vpop.permute.xlu1 %1755 }
 0x18f   : > { %3517 = vmatprep.mubr.msk.f32.mxu1 %vm3727_vm0, %v3724_v7  ;;  %3520 = vmatprep.subr.mxu0 %v3724_v7 }
 0x190   : > { %3525 = vmatprep.subr.mxu1 %v3724_v7  ;;  %3513 = vmatmul.mubr.msk.f32.vlgmr.msra.gmra.mxu0 %vm375_vm1, %v3861_v48 }
 0x191   : > { %3518 = vmatmul.mubr.msk.f32.vlgmr.msra.gmra.mxu1 %vm375_vm1, %v3944_v32  ;;  %3521 = vmatpush3.msra.mxu0 %v1368_v39 }
 0x192   : > { %3526 = vmatpush3.msra.mxu1 %v3897_v11  ;;  %3522 = vmatprep.mubr.msk.f32.mxu0 %vm3727_vm0, %v3724_v7  ;;  %v1858_v43 = vpop.permute.xlu0 %1857  ;;  %v2001_v44 = vpop.permute.xlu1 %2000 }
 0x193   : > { %3527 = vmatprep.mubr.msk.f32.mxu1 %vm3727_vm0, %v3724_v7  ;;  %3530 = vmatprep.subr.mxu0 %v3724_v7 }
 0x194   : > { %3535 = vmatprep.subr.mxu1 %v3724_v7  ;;  %3523 = vmatmul.mubr.msk.f32.vlgmr.msra.gmra.mxu0 %vm375_vm1, %v3934_v29 }
 0x195   : > { %3528 = vmatmul.mubr.msk.f32.vlgmr.msra.gmra.mxu1 %vm375_vm1, %v3861_v48  ;;  %3531 = vmatpush3.msra.mxu0 %v1511_v40 }
 0x196   : > { %3536 = vmatpush3.msra.mxu1 %v1613_v41  ;;  %3532 = vmatprep.mubr.msk.f32.mxu0 %vm3727_vm0, %v3724_v7  ;;  %v2103_v45 = vpop.permute.xlu0 %2102  ;;  %v2246_v46 = vpop.permute.xlu1 %2245 }
 0x197   : > { %3537 = vmatprep.mubr.msk.f32.mxu1 %vm3727_vm0, %v3724_v7  ;;  %3540 = vmatprep.subr.mxu0 %v3724_v7 }
 0x198   : > { %3545 = vmatprep.subr.mxu1 %v3724_v7  ;;  %3533 = vmatmul.mubr.msk.f32.vlgmr.msra.gmra.mxu0 %vm375_vm1, %v3944_v32 }
 0x199   : > { %3538 = vmatmul.mubr.msk.f32.vlgmr.msra.gmra.mxu1 %vm375_vm1, %v3934_v29  ;;  %3541 = vmatpush3.msra.mxu0 %v3906_v18 }
 0x19a   : > { %3546 = vmatpush3.msra.mxu1 %v1756_v42  ;;  %3542 = vmatprep.mubr.msk.f32.mxu0 %vm3727_vm0, %v3724_v7 }
 0x19b   : > { %3547 = vmatprep.mubr.msk.f32.mxu1 %vm3727_vm0, %v3724_v7  ;;  %3550 = vmatprep.subr.mxu0 %v3724_v7 }
 0x19c   : > { %3555 = vmatprep.subr.mxu1 %v3724_v7  ;;  %3543 = vmatmul.mubr.msk.f32.vlgmr.msra.gmra.mxu0 %vm375_vm1, %v3861_v48 }
 0x19d   : > { %3548 = vmatmul.mubr.msk.f32.vlgmr.msra.gmra.mxu1 %vm375_vm1, %v3944_v32  ;;  %3551 = vmatpush3.msra.mxu0 %v1858_v43 }
 0x19e   : > { %3556 = vmatpush3.msra.mxu1 %v3915_v24  ;;  %3552 = vmatprep.mubr.msk.f32.mxu0 %vm3727_vm0, %v3724_v7 }
 0x19f   : > { %3557 = vmatprep.mubr.msk.f32.mxu1 %vm3727_vm0, %v3724_v7  ;;  %3560 = vmatprep.subr.mxu0 %v3724_v7 }
 0x1a0   : > { %3565 = vmatprep.subr.mxu1 %v3724_v7  ;;  %3553 = vmatmul.mubr.msk.f32.vlgmr.msra.gmra.mxu0 %vm375_vm1, %v3934_v29 }
 0x1a1   : > { %3558 = vmatmul.mubr.msk.f32.vlgmr.msra.gmra.mxu1 %vm375_vm1, %v3861_v48  ;;  %3561 = vmatpush3.msra.mxu0 %v2001_v44 }
 0x1a2   : > { %3566 = vmatpush3.msra.mxu1 %v2103_v45  ;;  %3562 = vmatprep.mubr.msk.f32.mxu0 %vm3727_vm0, %v3724_v7 }
 0x1a3   : > { %3570 = vmatprep.subr.mxu0 %v3724_v7  ;;  %3567 = vmatprep.mubr.msk.f32.mxu1 %vm3727_vm0, %v3724_v7  ;;  %v4112_v2 = vpop.permute.xlu0 %601 }
 0x1a4   : > { %3575 = vmatprep.subr.mxu1 %v3724_v7  ;;  %3563 = vmatmul.mubr.msk.f32.vlgmr.msra.gmra.mxu0 %vm375_vm1, %v3944_v32 }
 0x1a5   : > { %3568 = vmatmul.mubr.msk.f32.vlgmr.msra.gmra.mxu1 %vm375_vm1, %v3934_v29  ;;  %3571 = vmatpush3.msra.mxu0 %v3922_v27 }
 0x1a6   : > { %3576 = vmatpush3.msra.mxu1 %v2246_v46  ;;  %3572 = vmatprep.mubr.msk.f32.mxu0 %vm3727_vm0, %v3724_v7 }
 0x1a7   : > { %3577 = vmatprep.mubr.msk.f32.mxu1 %vm3727_vm0, %v3724_v7  ;;  %3580 = vmatprep.subr.mxu0 %v3724_v7 }
 0x1a8   : > { %3573 = vmatmul.mubr.msk.f32.vlgmr.msra.gmra.mxu0 %vm375_vm1, %v3861_v48  ;;  %3595 = vmatprep.subr.mxu1 %v3724_v7  ;;  %v2363_v48 = vld [vmem:[%s4471_s5 + $0x28] sm:$0xff] }
 0x1a9   : > { %3578 = vmatmul.mubr.msk.f32.vlgmr.msra.gmra.mxu1 %vm375_vm1, %v3944_v32  ;;  %3592 = vmatprep.mubr.msk.f32.mxu0 %vm3727_vm0, %v3724_v7 }
 0x1aa   : > { %3607 = vmatprep.mubr.msk.f32.mxu1 %vm3727_vm0, %v3724_v7  ;;  %3581 = vmatpush3.msra.mxu0 %v3308_v50 }
 0x1ab   : > { %3596 = vmatpush3.msra.mxu1 %v2363_v48  ;;  %3582 = vmatprep.subr.mxu0 %v3724_v7 }
 0x1ac   : > { %3597 = vmatprep.subr.mxu1 %v3724_v7  ;;  %3583 = vmatpush3.msra.mxu0 %v3307_v51 }
 0x1ad   : > { %3598 = vmatpush3.msra.mxu1 %v2362_v52  ;;  %3584 = vmatprep.subr.mxu0 %v3724_v7 }
 0x1ae   : > { %3599 = vmatprep.subr.mxu1 %v3724_v7  ;;  %3585 = vmatpush3.msra.mxu0 %v3306_v53 }
 0x1af   : > { %3600 = vmatpush3.msra.mxu1 %v2361_v54  ;;  %3586 = vmatprep.subr.mxu0 %v3724_v7 }
 0x1b0   : > { %3601 = vmatprep.subr.mxu1 %v3724_v7  ;;  %3587 = vmatpush3.msra.mxu0 %v3305_v55 }
 0x1b1   : > { %3602 = vmatpush3.msra.mxu1 %v2360_v56  ;;  %3588 = vmatprep.subr.mxu0 %v3724_v7 }
 0x1b2   : > { %3603 = vmatprep.subr.mxu1 %v3724_v7  ;;  %3589 = vmatpush3.msra.mxu0 %v3304_v57 }
 0x1b3   : > { %3604 = vmatpush3.msra.mxu1 %v2359_v58  ;;  %3590 = vmatprep.subr.mxu0 %v3724_v7 }
 0x1b4   : > { %3605 = vmatprep.subr.mxu1 %v3724_v7  ;;  %3591 = vmatpush3.msra.mxu0 %v3303_v59 }
 0x1b5   : > { %3606 = vmatpush3.msra.mxu1 %v2358_v60  ;;  %3610 = vmatprep.subr.mxu0 %v3724_v7 }
 0x1b6   : > { %3625 = vmatprep.subr.mxu1 %v3724_v7 }
 0x1ca   : > { %v518_v47 = vpop.f32.mrf.mxu1 }
 0x1cc   : > { %v3469_v49 = vpop.f32.mrf.mxu1 }
 0x23c   : > { %v445_v61 = vpop.f32.mrf.mxu0 }
 0x23d   : > { %v519_v63 = vadd.f32 %v518_v47, %v445_v61 }
 0x23e   : > { %v3464_v62 = vpop.f32.mrf.mxu0 }
 0x240   : > { %v594_v0 = vpop.f32.mrf.mxu0  ;;  %v701_v1 = vpop.f32.mrf.mxu1 }
 0x241   : > { %v598_v3 = vadd.f32 %v594_v0, %v519_v63 }
 0x242   : > { %v3474_v4 = vpop.f32.mrf.mxu0  ;;  %v3479_v5 = vpop.f32.mrf.mxu1 }
 0x243   : > { %v604_v6 = vadd.f32 %v4112_v2, %v598_v3 }
 0x244   : > { %v771_v8 = vpop.f32.mrf.mxu0 }
 0x245   : > { %v4120_v9 = vmax.f32 %v604_v6, 0.0  ;;  %v772_v10 = vadd.f32 %v771_v8, %v701_v1  ;;  %v844_v11 = vpop.f32.mrf.mxu1 }
 0x246   : > { %v3484_v12 = vpop.f32.mrf.mxu0 }
 0x247   : > { %607 = vst.msk [vmem:[%s4118_s18] sm:$0xff] %vm606_vm2, %v4120_v9  ;;  %v848_v13 = vadd.f32 %v844_v11, %v772_v10  ;;  %v3489_v14 = vpop.f32.mrf.mxu1  ;;  %v2947_v26 = vrot.slane %v4120_v9, 6  ;;  %v3049_v30 = vrot.slane %v4120_v9, 7 }
 0x248   : > { %v946_v15 = vpop.f32.mrf.mxu0 }
 0x249   : > { %v849_v16 = vadd.f32 %v848_v13, %v4112_v2  ;;  %v1016_v17 = vpop.f32.mrf.mxu1 }
 0x24a   : > { %v3494_v18 = vpop.f32.mrf.mxu0  ;;  %v1017_v20 = vadd.f32 %v1016_v17, %v946_v15 }
 0x24b   : > { %v4126_v19 = vmax.f32 %v849_v16, 0.0  ;;  %v3499_v21 = vpop.f32.mrf.mxu1 }
 0x24c   : > { %v1089_v22 = vpop.f32.mrf.mxu0 }
 0x24d   : > { %3266 = vst.msk [vmem:[%s4118_s18 + $0x8] sm:$0xff] %vm606_vm2, %v4126_v19  ;;  %v1093_v23 = vadd.f32 %v1089_v22, %v1017_v20  ;;  %v1191_v24 = vpop.f32.mrf.mxu1  ;;  %v2949_v27 = vrot.slane %v4126_v19, 5  ;;  %v3051_v31 = vrot.slane %v4126_v19, 6  ;;  %v2324_v22 = vrot.slane %v4126_v19, 7 }
 0x24e   : > { %v3504_v25 = vpop.f32.mrf.mxu0 }
 0x24f   : > { %v1094_v28 = vadd.f32 %v1093_v23, %v4112_v2  ;;  %v3509_v29 = vpop.f32.mrf.mxu1  ;;  %v2961_v33 = vsel %vm2344_vm3, %v2947_v26, %v2949_v27  ;;  %v3063_v37 = vsel %vm2344_vm3, %v3049_v30, %v3051_v31 }
 0x250   : > { %v1261_v32 = vpop.f32.mrf.mxu0 }
 0x251   : > { %v4137_v34 = vmax.f32 %v1094_v28, 0.0  ;;  %v1262_v35 = vadd.f32 %v1261_v32, %v1191_v24  ;;  %v1334_v36 = vpop.f32.mrf.mxu1  ;;  %v2365_v24 = vrot.slane %v4120_v9, 1 }
 0x252   : > { %v3514_v38 = vpop.f32.mrf.mxu0 }
 0x253   : > { %3272 = vst.msk [vmem:[%s4118_s18 + $0x10] sm:$0xff] %vm606_vm2, %v4137_v34  ;;  %v1338_v39 = vadd.f32 %v1334_v36, %v1262_v35  ;;  %v3519_v40 = vpop.f32.mrf.mxu1  ;;  %v2951_v42 = vrot.slane %v4137_v34, 4  ;;  %v3053_v45 = vrot.slane %v4137_v34, 5  ;;  %v2367_v25 = vrot.slane %v4137_v34, 7 }
 0x254   : > { %v1436_v41 = vpop.f32.mrf.mxu0  ;;  %v2327_v26 = vrot.slane %v4137_v34, 6  ;;  %v2379_v32 = vsel %vm2344_vm3, %v2365_v24, %v4126_v19  ;;  %v2345_v38 = vsel %vm2344_vm3, %v4120_v9, %v2324_v22 }
 0x255   : > { %v1339_v43 = vadd.f32 %v1338_v39, %v4112_v2  ;;  %v1506_v44 = vpop.f32.mrf.mxu1  ;;  %v4149_v48 = vsel %vm2346_vm4, %v2961_v33, %v2951_v42  ;;  %v4152_v51 = vsel %vm2346_vm4, %v3063_v37, %v3053_v45  ;;  %v2380_v40 = vsel %vm2346_vm4, %v2379_v32, %v2367_v25  ;;  %v3318_v32 = vld [vmem:[%s4471_s5 + $0x90] sm:$0xff] }
 0x256   : > { %v3524_v46 = vpop.f32.mrf.mxu0  ;;  %v1507_v49 = vadd.f32 %v1506_v44, %v1436_v41  ;;  %v2347_v42 = vsel %vm2346_vm4, %v2345_v38, %v2327_v26 }
 0x257   : > { %v4146_v47 = vmax.f32 %v1339_v43, 0.0  ;;  %v3529_v50 = vpop.f32.mrf.mxu1 }
 0x258   : > { %v1579_v52 = vpop.f32.mrf.mxu0 }
 0x259   : > { %3278 = vst.msk [vmem:[%s4118_s18 + $0x18] sm:$0xff] %vm606_vm2, %v4146_v47  ;;  %v1583_v53 = vadd.f32 %v1579_v52, %v1507_v49  ;;  %v1681_v54 = vpop.f32.mrf.mxu1  ;;  %v2369_v29 = vrot.slane %v4146_v47, 6  ;;  %v2330_v30 = vrot.slane %v4146_v47, 5 }
 0x25a   : > { %v3534_v55 = vpop.f32.mrf.mxu0 }
 0x25b   : > { %v1584_v56 = vadd.f32 %v1583_v53, %v4112_v2  ;;  %v3539_v57 = vpop.f32.mrf.mxu1  ;;  %v2349_v44 = vsel %vm2348_vm5, %v2347_v42, %v2330_v30  ;;  %v3330_v42 = vld [vmem:[%s4471_s5 + $0xe8] sm:$0xff] }
 0x25c   : > { %v1751_v58 = vpop.f32.mrf.mxu0  ;;  %v3323_v57 = vld [vmem:[%s4471_s5 + $0xb8] sm:$0xff] }
 0x25d   : > { %v4158_v59 = vmax.f32 %v1584_v56, 0.0  ;;  %v1752_v60 = vadd.f32 %v1751_v58, %v1681_v54  ;;  %v1824_v61 = vpop.f32.mrf.mxu1  ;;  %v3316_v56 = vld [vmem:[%s4471_s5 + $0x88] sm:$0xff] }
 0x25e   : > { %v3544_v62 = vpop.f32.mrf.mxu0 }
 0x25f   : > { %3284 = vst.msk [vmem:[%s4118_s18 + $0x20] sm:$0xff] %vm606_vm2, %v4158_v59  ;;  %v1828_v63 = vadd.f32 %v1824_v61, %v1752_v60  ;;  %v3549_v0 = vpop.f32.mrf.mxu1  ;;  %v2371_v31 = vrot.slane %v4158_v59, 5  ;;  %v2333_v33 = vrot.slane %v4158_v59, 4  ;;  %v3315_v61 = vld [vmem:[%s4471_s5 + $0x80] sm:$0xff]  ;;  %v3322_v62 = vld [vmem:[%s4471_s5 + $0xb0] sm:$0xff] }
 0x260   : > { %v1926_v1 = vpop.f32.mrf.mxu0  ;;  %v3321_v0 = vld [vmem:[%s4471_s5 + $0xa8] sm:$0xff] }
 0x261   : > { %v1829_v3 = vadd.f32 %v1828_v63, %v4112_v2  ;;  %v1996_v4 = vpop.f32.mrf.mxu1  ;;  %v2351_v46 = vsel %vm2350_vm6, %v2349_v44, %v2333_v33  ;;  %v3314_v63 = vld [vmem:[%s4471_s5 + $0x78] sm:$0xff]  ;;  %v3329_v44 = vld [vmem:[%s4471_s5 + $0xe0] sm:$0xff] }
 0x262   : > { %v3554_v5 = vpop.f32.mrf.mxu0  ;;  %v1997_v8 = vadd.f32 %v1996_v4, %v1926_v1  ;;  %v2541_v1 = vrot.slane %v4126_v19, 1  ;;  %v2645_v4 = vrot.slane %v4137_v34, 1 }
 0x263   : > { %v4164_v6 = vmax.f32 %v1829_v3, 0.0  ;;  %v3559_v10 = vpop.f32.mrf.mxu1  ;;  %v2643_v3 = vrot.slane %v4126_v19, 2  ;;  %v3313_v5 = vld [vmem:[%s4471_s5 + $0x70] sm:$0xff] }
 0x264   : > { %v2069_v11 = vpop.f32.mrf.mxu0  ;;  %v2539_v10 = vrot.slane %v4120_v9, 2 }
 0x265   : > { %3290 = vst.msk [vmem:[%s4118_s18 + $0x28] sm:$0xff] %vm606_vm2, %v4164_v6  ;;  %v2073_v12 = vadd.f32 %v2069_v11, %v1997_v8  ;;  %v2171_v13 = vpop.f32.mrf.mxu1  ;;  %v2373_v36 = vrot.slane %v4164_v6, 4  ;;  %v2336_v37 = vrot.slane %v4164_v6, 3  ;;  %v3320_v8 = vld [vmem:[%s4471_s5 + $0xa0] sm:$0xff]  ;;  %v2543_v11 = vrot.slane %v4146_v47, 7 }
 0x266   : > { %v3564_v14 = vpop.f32.mrf.mxu0 }
 0x267   : > { %v2074_v15 = vadd.f32 %v2073_v12, %v4112_v2  ;;  %v3569_v16 = vpop.f32.mrf.mxu1  ;;  %v2353_v53 = vsel %vm2352_vm7, %v2351_v46, %v2336_v37  ;;  %v2641_v12 = vrot.slane %v4120_v9, 3  ;;  %v2647_v14 = vrot.slane %v4158_v59, 7  ;;  %v3328_v46 = vld [vmem:[%s4471_s5 + $0xd8] sm:$0xff] }
 0x268   : > { %v2241_v17 = vpop.f32.mrf.mxu0  ;;  %v3319_v16 = vld [vmem:[%s4471_s5 + $0x98] sm:$0xff] }
 0x269   : > { %v4170_v18 = vmax.f32 %v2074_v15, 0.0  ;;  %v2242_v20 = vadd.f32 %v2241_v17, %v2171_v13  ;;  %v2314_v21 = vpop.f32.mrf.mxu1  ;;  %v2545_v13 = vrot.slane %v4158_v59, 6  ;;  %v3312_v15 = vld [vmem:[%s4471_s5 + $0x68] sm:$0xff]  ;;  %v2547_v17 = vrot.slane %v4164_v6, 5 }
 0x26a   : > { %v3574_v23 = vpop.f32.mrf.mxu0  ;;  %v2655_v22 = vsel %vm2344_vm3, %v2641_v12, %v2643_v3 }
 0x26b   : > { %3296 = vst.msk [vmem:[%s4118_s18 + $0x30] sm:$0xff] %vm606_vm2, %v4170_v18  ;;  %v2318_v27 = vadd.f32 %v2314_v21, %v2242_v20  ;;  %v3579_v28 = vpop.f32.mrf.mxu1  ;;  %v2375_v39 = vrot.slane %v4170_v18, 3  ;;  %v2339_v41 = vrot.slane %v4170_v18, 2  ;;  %v2553_v20 = vsel %vm2344_vm3, %v2539_v10, %v2541_v1 }
 0x26c   : > { %v2649_v21 = vrot.slane %v4164_v6, 6  ;;  %v2549_v23 = vrot.slane %v4170_v18, 4  ;;  %v2554_v24 = vsel %vm2346_vm4, %v2553_v20, %v4137_v34  ;;  %v2651_v25 = vrot.slane %v4170_v18, 5 }
 0x26d   : > { %v2319_v35 = vadd.f32 %v2318_v27, %v4112_v2  ;;  %v2381_v2 = vsel %vm2348_vm5, %v2380_v40, %v2369_v29  ;;  %v2355_v55 = vsel %vm2354_vm8, %v2353_v53, %v2339_v41  ;;  %v2656_v26 = vsel %vm2346_vm4, %v2655_v22, %v2645_v4  ;;  %v3311_v27 = vld [vmem:[%s4471_s5 + $0x60] sm:$0xff] }
 0x26e   : > { %v2382_v45 = vsel %vm2350_vm6, %v2381_v2, %v2371_v31  ;;  %v2555_v29 = vsel %vm2348_vm5, %v2554_v24, %v2543_v11  ;;  %v2657_v31 = vsel %vm2348_vm5, %v2656_v26, %v4146_v47  ;;  %v3337_v2 = vld [vmem:[%s4471_s5 + $0x118] sm:$0xff]  ;;  %v2747_v53 = vrot.slane %v4137_v34, 2 }
 0x26f   : > { %v4194_v43 = vmax.f32 %v2319_v35, 0.0  ;;  %v2383_v50 = vsel %vm2352_vm7, %v2382_v45, %v2373_v36  ;;  %v2556_v33 = vsel %vm2350_vm6, %v2555_v29, %v2545_v13  ;;  %v2658_v35 = vsel %vm2350_vm6, %v2657_v31, %v2647_v14  ;;  %v3336_v45 = vld [vmem:[%s4471_s5 + $0x110] sm:$0xff]  ;;  %v3351_v26 = vld [vmem:[%s4471_s5 + $0x178] sm:$0xff] }
 0x270   : > { %v2384_v54 = vsel %vm2354_vm8, %v2383_v50, %v2375_v39  ;;  %v2557_v36 = vsel %vm2352_vm7, %v2556_v33, %v2547_v17  ;;  %v2659_v37 = vsel %vm2352_vm7, %v2658_v35, %v2649_v21  ;;  %v2745_v50 = vrot.slane %v4126_v19, 3  ;;  %v3332_v14 = vld [vmem:[%s4471_s5 + $0xf0] sm:$0xff]  ;;  %v3342_v29 = vld [vmem:[%s4471_s5 + $0x138] sm:$0xff] }
 0x271   : > { %3302 = vst.msk [vmem:[%s4118_s18 + $0x38] sm:$0xff] %vm606_vm2, %v4194_v43  ;;  %v2377_v49 = vrot.slane %v4194_v43, 2  ;;  %v2342_v52 = vrot.slane %v4194_v43, 1  ;;  %v2551_v28 = vrot.slane %v4194_v43, 3  ;;  %v2653_v30 = vrot.slane %v4194_v43, 4  ;;  %v3341_v31 = vld [vmem:[%s4471_s5 + $0x130] sm:$0xff] }
 0x272   : > { %v2558_v38 = vsel %vm2354_vm8, %v2557_v36, %v2549_v23  ;;  %v2660_v39 = vsel %vm2354_vm8, %v2659_v37, %v2651_v25  ;;  %v2753_v1 = vrot.slane %v4170_v18, 6  ;;  %v2855_v4 = vrot.slane %v4170_v18, 7  ;;  %v3344_v25 = vld [vmem:[%s4471_s5 + $0x148] sm:$0xff] }
 0x273   : > { %v2385_v58 = vsel %vm2356_vm9, %v2384_v54, %v2377_v49  ;;  %v2357_v60 = vsel %vm2356_vm9, %v2355_v55, %v2342_v52  ;;  %v2559_v40 = vsel %vm2356_vm9, %v2558_v38, %v2551_v28  ;;  %v2661_v41 = vsel %vm2356_vm9, %v2660_v39, %v2653_v30  ;;  %v3335_v49 = vld [vmem:[%s4471_s5 + $0x108] sm:$0xff]  ;;  %v3327_v55 = vld [vmem:[%s4471_s5 + $0xd0] sm:$0xff]  ;;  %v3347_v39 = vld [vmem:[%s4471_s5 + $0x158] sm:$0xff] }
 0x274   : > { %3593 = vmatmul.mubr.msk.f32.vlgmr.msra.gmra.mxu0 %vm606_vm2, %v2385_v58  ;;  %3608 = vmatmul.mubr.msk.f32.vlgmr.msra.gmra.mxu1 %vm606_vm2, %v2357_v60  ;;  %v2847_v52 = vrot.slane %v4126_v19, 4  ;;  %v2849_v54 = vrot.slane %v4137_v34, 3  ;;  %v2743_v19 = vrot.slane %v4120_v9, 4  ;;  %v2845_v58 = vrot.slane %v4120_v9, 5  ;;  %v3350_v28 = vld [vmem:[%s4471_s5 + $0x170] sm:$0xff]  ;;  %v3349_v30 = vld [vmem:[%s4471_s5 + $0x168] sm:$0xff] }
 0x275   : > { %3611 = vmatpush3.msra.mxu0 %v3316_v56  ;;  %3626 = vmatpush3.msra.mxu1 %v3323_v57  ;;  %v3334_v56 = vld [vmem:[%s4471_s5 + $0x100] sm:$0xff]  ;;  %v2749_v57 = vrot.slane %v4146_v47, 1  ;;  %v2851_v34 = vrot.slane %v4146_v47, 2  ;;  %v2853_v60 = vrot.slane %v4158_v59, 1  ;;  %v2751_v9 = vrot.slane %v4164_v6, 7  ;;  %v3340_v38 = vld [vmem:[%s4471_s5 + $0x128] sm:$0xff] }
 0x276   : > { %3612 = vmatprep.subr.mxu0 %v3724_v7  ;;  %3627 = vmatprep.subr.mxu1 %v3724_v7  ;;  %v2755_v10 = vrot.slane %v4194_v43, 5  ;;  %v2857_v12 = vrot.slane %v4194_v43, 6  ;;  %v2953_v33 = vrot.slane %v4146_v47, 3  ;;  %v3055_v35 = vrot.slane %v4146_v47, 4 }
 0x277   : > { %3613 = vmatpush3.msra.mxu0 %v3315_v61  ;;  %3628 = vmatpush3.msra.mxu1 %v3322_v62  ;;  %v3326_v61 = vld [vmem:[%s4471_s5 + $0xc8] sm:$0xff]  ;;  %v3333_v62 = vld [vmem:[%s4471_s5 + $0xf8] sm:$0xff]  ;;  %v2955_v36 = vrot.slane %v4158_v59, 2  ;;  %v3057_v37 = vrot.slane %v4158_v59, 3  ;;  %v2957_v47 = vrot.slane %v4164_v6, 1 }
 0x278   : > { %3614 = vmatprep.subr.mxu0 %v3724_v7  ;;  %3629 = vmatprep.subr.mxu1 %v3724_v7 }
 0x279   : > { %3615 = vmatpush3.msra.mxu0 %v3314_v63  ;;  %3630 = vmatpush3.msra.mxu1 %v3321_v0  ;;  %v2757_v63 = vsel %vm2344_vm3, %v2743_v19, %v2745_v50  ;;  %v2859_v0 = vsel %vm2344_vm3, %v2845_v58, %v2847_v52 }
 0x27a   : > { %3616 = vmatprep.subr.mxu0 %v3724_v7  ;;  %3631 = vmatprep.subr.mxu1 %v3724_v7  ;;  %v2758_v3 = vsel %vm2346_vm4, %v2757_v63, %v2747_v53 }
 0x27b   : > { %3617 = vmatpush3.msra.mxu0 %v3313_v5  ;;  %3632 = vmatpush3.msra.mxu1 %v3320_v8  ;;  %v2860_v5 = vsel %vm2346_vm4, %v2859_v0, %v2849_v54  ;;  %v3325_v8 = vld [vmem:[%s4471_s5 + $0xc0] sm:$0xff]  ;;  %v2759_v11 = vsel %vm2348_vm5, %v2758_v3, %v2749_v57 }
 0x27c   : > { %3618 = vmatprep.subr.mxu0 %v3724_v7  ;;  %3633 = vmatprep.subr.mxu1 %v3724_v7  ;;  %v2861_v13 = vsel %vm2348_vm5, %v2860_v5, %v2851_v34 }
 0x27d   : > { %3619 = vmatpush3.msra.mxu0 %v3312_v15  ;;  %3634 = vmatpush3.msra.mxu1 %v3319_v16  ;;  %v2760_v15 = vsel %vm2350_vm6, %v2759_v11, %v4158_v59  ;;  %v2862_v16 = vsel %vm2350_vm6, %v2861_v13, %v2853_v60  ;;  %v3061_v59 = vrot.slane %v4170_v18, 1 }
 0x27e   : > { %3620 = vmatprep.subr.mxu0 %v3724_v7  ;;  %3635 = vmatprep.subr.mxu1 %v3724_v7  ;;  %v2761_v17 = vsel %vm2352_vm7, %v2760_v15, %v2751_v9  ;;  %v2863_v20 = vsel %vm2352_vm7, %v2862_v16, %v4164_v6 }
 0x27f   : > { %3621 = vmatpush3.msra.mxu0 %v3311_v27  ;;  %3622 = vmatprep.mubr.msk.f32.mxu0 %vm3727_vm0, %v3724_v7  ;;  %v2762_v21 = vsel %vm2354_vm8, %v2761_v17, %v2753_v1  ;;  %v2864_v22 = vsel %vm2354_vm8, %v2863_v20, %v2855_v4  ;;  %v3343_v27 = vld [vmem:[%s4471_s5 + $0x140] sm:$0xff] }
 0x280   : > { %3636 = vmatpush3.msra.mxu1 %v3318_v32  ;;  %3637 = vmatprep.mubr.msk.f32.mxu1 %vm3727_vm0, %v3724_v7  ;;  %v2763_v23 = vsel %vm2356_vm9, %v2762_v21, %v2755_v10  ;;  %v2865_v24 = vsel %vm2356_vm9, %v2864_v22, %v2857_v12  ;;  %v3348_v32 = vld [vmem:[%s4471_s5 + $0x160] sm:$0xff] }
 0x281   : > { %3623 = vmatmul.mubr.msk.f32.vlgmr.msra.gmra.mxu0 %vm606_vm2, %v2559_v40  ;;  %3638 = vmatmul.mubr.msk.f32.vlgmr.msra.gmra.mxu1 %vm606_vm2, %v2661_v41  ;;  %v3059_v40 = vrot.slane %v4164_v6, 2  ;;  %v3339_v41 = vld [vmem:[%s4471_s5 + $0x120] sm:$0xff]  ;;  %v3065_v6 = vsel %vm2348_vm5, %v4152_v51, %v3055_v35 }
 0x282   : > { %3640 = vmatprep.subr.mxu0 %v3724_v7  ;;  %3655 = vmatprep.subr.mxu1 %v3724_v7 }
 0x283   : > { %3641 = vmatpush3.msra.mxu0 %v3330_v42  ;;  %3656 = vmatpush3.msra.mxu1 %v3337_v2  ;;  %v2959_v42 = vrot.slane %v4194_v43, 7  ;;  %v2963_v2 = vsel %vm2348_vm5, %v4149_v48, %v2953_v33 }
 0x284   : > { %3642 = vmatprep.subr.mxu0 %v3724_v7  ;;  %3657 = vmatprep.subr.mxu1 %v3724_v7 }
 0x285   : > { %3643 = vmatpush3.msra.mxu0 %v3329_v44  ;;  %3658 = vmatpush3.msra.mxu1 %v3336_v45  ;;  %v3346_v44 = vld [vmem:[%s4471_s5 + $0x150] sm:$0xff]  ;;  %v2964_v45 = vsel %vm2350_vm6, %v2963_v2, %v2955_v36 }
 0x286   : > { %3644 = vmatprep.subr.mxu0 %v3724_v7  ;;  %3659 = vmatprep.subr.mxu1 %v3724_v7 }
 0x287   : > { %3645 = vmatpush3.msra.mxu0 %v3328_v46  ;;  %3660 = vmatpush3.msra.mxu1 %v3335_v49  ;;  %v3066_v46 = vsel %vm2350_vm6, %v3065_v6, %v3057_v37  ;;  %v2965_v49 = vsel %vm2352_vm7, %v2964_v45, %v2957_v47 }
 0x288   : > { %3646 = vmatprep.subr.mxu0 %v3724_v7  ;;  %3661 = vmatprep.subr.mxu1 %v3724_v7  ;;  %v3067_v48 = vsel %vm2352_vm7, %v3066_v46, %v3059_v40  ;;  %v2966_v51 = vsel %vm2354_vm8, %v2965_v49, %v4170_v18 }
 0x289   : > { %3647 = vmatpush3.msra.mxu0 %v3327_v55  ;;  %3662 = vmatpush3.msra.mxu1 %v3334_v56  ;;  %v3068_v50 = vsel %vm2354_vm8, %v3067_v48, %v3061_v59  ;;  %v2967_v52 = vsel %vm2356_vm9, %v2966_v51, %v2959_v42 }
 0x28a   : > { %3648 = vmatprep.subr.mxu0 %v3724_v7  ;;  %3663 = vmatprep.subr.mxu1 %v3724_v7  ;;  %v3069_v53 = vsel %vm2356_vm9, %v3068_v50, %v4194_v43 }
 0x28b   : > { %3649 = vmatpush3.msra.mxu0 %v3326_v61  ;;  %3664 = vmatpush3.msra.mxu1 %v3333_v62 }
 0x28c   : > { %3650 = vmatprep.subr.mxu0 %v3724_v7  ;;  %3665 = vmatprep.subr.mxu1 %v3724_v7 }
 0x28d   : > { %3651 = vmatpush3.msra.mxu0 %v3325_v8  ;;  %3652 = vmatprep.mubr.msk.f32.mxu0 %vm3727_vm0, %v3724_v7  ;;  %v3353_v8 = vld [vmem:[%s4472_s6] ss:$0 sm:$0xff] }
 0x28e   : > { %3666 = vmatpush3.msra.mxu1 %v3332_v14  ;;  %3667 = vmatprep.mubr.msk.f32.mxu1 %vm3727_vm0, %v3724_v7 }
 0x28f   : > { %3653 = vmatmul.mubr.msk.f32.vlgmr.msra.gmra.mxu0 %vm606_vm2, %v2763_v23  ;;  %3668 = vmatmul.mubr.msk.f32.vlgmr.msra.gmra.mxu1 %vm606_vm2, %v2865_v24 }
 0x290   : > { %3670 = vmatprep.subr.mxu0 %v3724_v7  ;;  %3685 = vmatprep.subr.mxu1 %v3724_v7 }
 0x291   : > { %3671 = vmatpush3.msra.mxu0 %v3344_v25  ;;  %3686 = vmatpush3.msra.mxu1 %v3351_v26 }
 0x292   : > { %3672 = vmatprep.subr.mxu0 %v3724_v7  ;;  %3687 = vmatprep.subr.mxu1 %v3724_v7 }
 0x293   : > { %3673 = vmatpush3.msra.mxu0 %v3343_v27  ;;  %3688 = vmatpush3.msra.mxu1 %v3350_v28 }
 0x294   : > { %3674 = vmatprep.subr.mxu0 %v3724_v7  ;;  %3689 = vmatprep.subr.mxu1 %v3724_v7 }
 0x295   : > { %3675 = vmatpush3.msra.mxu0 %v3342_v29  ;;  %3690 = vmatpush3.msra.mxu1 %v3349_v30 }
 0x296   : > { %3676 = vmatprep.subr.mxu0 %v3724_v7  ;;  %3691 = vmatprep.subr.mxu1 %v3724_v7 }
 0x297   : > { %3677 = vmatpush3.msra.mxu0 %v3341_v31  ;;  %3692 = vmatpush3.msra.mxu1 %v3348_v32 }
 0x298   : > { %3678 = vmatprep.subr.mxu0 %v3724_v7  ;;  %3693 = vmatprep.subr.mxu1 %v3724_v7 }
 0x299   : > { %3679 = vmatpush3.msra.mxu0 %v3340_v38  ;;  %3694 = vmatpush3.msra.mxu1 %v3347_v39 }
 0x29a   : > { %3680 = vmatprep.subr.mxu0 %v3724_v7  ;;  %3695 = vmatprep.subr.mxu1 %v3724_v7 }
 0x29b   : > { %3681 = vmatpush3.msra.mxu0 %v3339_v41  ;;  %3682 = vmatprep.mubr.msk.f32.mxu0 %vm3727_vm0, %v3724_v7 }
 0x29c   : > { %3696 = vmatpush3.msra.mxu1 %v3346_v44  ;;  %3697 = vmatprep.mubr.msk.f32.mxu1 %vm3727_vm0, %v3724_v7 }
 0x29d   : > { %3683 = vmatmul.mubr.msk.f32.vlgmr.msra.gmra.mxu0 %vm606_vm2, %v2967_v52  ;;  %3698 = vmatmul.mubr.msk.f32.vlgmr.msra.gmra.mxu1 %vm606_vm2, %v3069_v53 }
 0x334   : > { %v2462_v54 = vpop.f32.mrf.mxu0  ;;  %v2535_v55 = vpop.f32.mrf.mxu1 }
 0x335   : > { %v2536_v61 = vadd.f32 %v2535_v55, %v2462_v54 }
 0x336   : > { %v3594_v18 = vpop.f32.mrf.mxu0  ;;  %v3609_v56 = vpop.f32.mrf.mxu1 }
 0x341   : > { %v2636_v19 = vpop.f32.mrf.mxu0  ;;  %v2738_v57 = vpop.f32.mrf.mxu1 }
 0x342   : > { %v2640_v43 = vadd.f32 %v2636_v19, %v2536_v61 }
 0x343   : > { %v3624_v58 = vpop.f32.mrf.mxu0  ;;  %v3639_v34 = vpop.f32.mrf.mxu1 }
 0x344   : > { %v2742_v63 = vadd.f32 %v2738_v57, %v2640_v43 }
 0x34f   : > { %v2840_v7 = vpop.f32.mrf.mxu0  ;;  %v2942_v60 = vpop.f32.mrf.mxu1 }
 0x350   : > { %v2844_v0 = vadd.f32 %v2840_v7, %v2742_v63 }
 0x351   : > { %v3654_v62 = vpop.f32.mrf.mxu0  ;;  %v3669_v9 = vpop.f32.mrf.mxu1 }
 0x352   : > { %v2946_v1 = vadd.f32 %v2942_v60, %v2844_v0 }
 0x35d   : > { %v3044_v3 = vpop.f32.mrf.mxu0  ;;  %v3146_v4 = vpop.f32.mrf.mxu1 }
 0x35e   : > { %v3048_v5 = vadd.f32 %v3044_v3, %v2946_v1 }
 0x35f   : > { %v3684_v10 = vpop.f32.mrf.mxu0  ;;  %v3699_v11 = vpop.f32.mrf.mxu1 }
 0x360   : > { %v3150_v12 = vadd.f32 %v3146_v4, %v3048_v5 }
 0x362   : > { %v3158_v13 = vadd.f32 %v3353_v8, %v3150_v12 }
 0x364   : > { %3159 = vst [vmem:[%s316_s16] sm:$0xff] %v3158_v13 }
 0x365 PF: > { %s19_s27 = sadd.s32 1, %s3721_s27  }
 0x366   : > { %p16_p5 = scmp.ge.s32.totalorder %s19_s27, 4  }
 0x368   :  { %18 = sbr.rel (!%p16_p5) target bundleno = 1 (0x1), region = 115 }

</bundles_post_ra>
